<compile_context>
chip_gen: v7x
topology: tpu7x:2x2x1
jax: 0.10.0
libtpu: 0.0.40
codegen_flags: <defaults>
</compile_context>

<pallas_src>
import jax
import jax.numpy as jnp
from jax import lax
from jax.experimental import pallas as pl
from jax.experimental.pallas import tpu as pltpu


def actor_kernel(x_ref, wih_ref, whh_ref, bl_ref,
                 w1_ref, b1_ref, w2_ref, b2_ref, wpi_ref, bpi_ref,
                 out_ref, xg_ref):
    """Fused LSTM + MLP head for one batch block.

    x_ref:   (bb, T, D)   input slice (batch-major)
    wih_ref: (D, 4H)      gate-fused input weights, gate order (i, f, g, o)
    whh_ref: (H, 4H)      gate-fused recurrent weights
    bl_ref:  (1, 4H)      gate-fused bias (b_ih + b_hh)
    w1_ref:  (H, F1),  b1_ref: (1, F1)
    w2_ref:  (F1, F2), b2_ref: (1, F2)
    wpi_ref: (F2, A),  bpi_ref: (1, A)
    out_ref: (bb, T, A)
    xg_ref:  (bb, T, 4H)  VMEM scratch for the hoisted input projection.
    """
    bb, T, D = x_ref.shape
    H4 = whh_ref.shape[1]
    H = H4 // 4
    A = out_ref.shape[2]

    # ---- Hoisted input projection: ONE matmul over all bb*T rows producing
    # ---- all four gates in 128 dense lanes, LSTM bias folded in.
    x2d = x_ref[...].reshape(bb * T, D)
    xg_ref[...] = (
        jnp.dot(x2d, wih_ref[...], preferred_element_type=jnp.float32)
        + bl_ref[...]
    ).reshape(bb, T, H4)

    whh = whh_ref[...]                      # read once, stays in vregs

    h = jnp.zeros((bb, H), jnp.float32)
    c = jnp.zeros((bb, H), jnp.float32)
    hs = []

    # ---- Fully-unrolled recurrence: one (bb,H)x(H,4H) matmul per step plus
    # ---- gate nonlinearities and the cell update. Gate extraction is a
    # ---- static 32-lane slice (XLU slot), not extra matmuls.
    for t in range(T):
        gates = xg_ref[:, t, :] + jnp.dot(
            h, whh, preferred_element_type=jnp.float32)       # (bb, 4H)
        i_g = jax.nn.sigmoid(gates[:, 0 * H:1 * H])
        f_g = jax.nn.sigmoid(gates[:, 1 * H:2 * H])
        g_g = jnp.tanh(gates[:, 2 * H:3 * H])
        o_g = jax.nn.sigmoid(gates[:, 3 * H:4 * H])
        c = f_g * c + i_g * g_g
        h = o_g * jnp.tanh(c)
        hs.append(h)                        # stays in registers, off the path

    # ---- Deferred MLP head over all bb*T rows: 3 matmuls + one store.
    hs2d = jnp.stack(hs, axis=1).reshape(bb * T, H)

    z1 = jnp.dot(hs2d, w1_ref[...],
                 preferred_element_type=jnp.float32) + b1_ref[...]
    z1 = jnp.where(z1 > 0, z1, 0.01 * z1)               # leaky_relu (0.01)
    z2 = jnp.dot(z1, w2_ref[...],
                 preferred_element_type=jnp.float32) + b2_ref[...]
    z2 = jnp.where(z2 > 0, z2, 0.01 * z2)               # leaky_relu (0.01)
    zp = jnp.dot(z2, wpi_ref[...],
                 preferred_element_type=jnp.float32) + bpi_ref[...]

    # Softsign: x / (1 + |x|), exact divide (EUP has plenty of slack here).
    pi = zp / (1.0 + jnp.abs(zp))
    out_ref[...] = pi.reshape(bb, T, A)


def make_actor_params(key, input_dims, lstm_hidden, fc1_dims, fc2_dims,
                      n_actions):
    """PyTorch-style uniform(-1/sqrt(fan), 1/sqrt(fan)) init.

    LSTM weights are stored gate-fused (order i, f, g, o along the last axis)
    and already transposed so the kernel computes x @ W directly.
    """
    ks = jax.random.split(key, 10)
    H = lstm_hidden

    def unif(k, shape, fan):
        bound = 1.0 / jnp.sqrt(jnp.float32(fan))
        return jax.random.uniform(k, shape, jnp.float32, -bound, bound)

    return {
        "w_ih": unif(ks[0], (input_dims, 4 * H), H),          # (D, 4H)
        "w_hh": unif(ks[1], (H, 4 * H), H),                   # (H, 4H)
        "b":    unif(ks[2], (1, 4 * H), H) + unif(ks[3], (1, 4 * H), H),
        "w1":   unif(ks[4], (H, fc1_dims), H),
        "b1":   unif(ks[5], (1, fc1_dims), H),
        "w2":   unif(ks[6], (fc1_dims, fc2_dims), fc1_dims),
        "b2":   unif(ks[7], (1, fc2_dims), fc1_dims),
        "wpi":  unif(ks[8], (fc2_dims, n_actions), fc2_dims),
        "bpi":  unif(ks[9], (1, n_actions), fc2_dims),
    }


def _pick_block_b(B):
    # v5e/v6e (1 TC): largest block / smallest grid.  For larger B, use a
    # sublane-friendly (multiple of 8) block capped for VMEM headroom so it
    # also fits v7x's 64 MiB; on v7x with large B callers may instead pass
    # block_b = cdiv(B, 2) rounded to a multiple of 8 so the grid is even and
    # both TensorCores get work under dimension_semantics=("parallel",).
    if B <= 8:
        return B
    return max(8, min((B // 8) * 8, 256))


def actor_forward(state, params, *, block_b=None):
    """state: (B, T, D) float32 -> (B, T, n_actions) float32."""
    B, T, D = state.shape
    H = params["w_hh"].shape[0]
    F1 = params["w1"].shape[1]
    F2 = params["w2"].shape[1]
    A = params["wpi"].shape[1]

    state = state.astype(jnp.float32)
    if block_b is None:
        block_b = _pick_block_b(B)
    block_b = max(1, min(block_b, B))
    grid = (pl.cdiv(B, block_b),)

    def rep(shape):
        # Full-array block, replicated across the batch grid.  Constant block
        # index => single-buffer (no pointless double-buffering DMA/VMEM).
        nd = len(shape)
        return pl.BlockSpec(shape, lambda b, _nd=nd: (0,) * _nd,
                            pipeline_mode=pl.Buffered(1))

    flops = 2 * B * T * (D * 4 * H + H * 4 * H + H * F1 + F1 * F2 + F2 * A)
    transcendentals = B * T * 5 * H
    bytes_accessed = 4 * (B * T * D + B * T * A
                          + D * 4 * H + H * 4 * H + 4 * H
                          + H * F1 + F1 + F1 * F2 + F2 + F2 * A + A)

    return pl.pallas_call(
        actor_kernel,
        out_shape=jax.ShapeDtypeStruct((B, T, A), jnp.float32),
        grid=grid,
        in_specs=[
            pl.BlockSpec((block_b, T, D), lambda b: (b, 0, 0)),
            rep((D, 4 * H)),
            rep((H, 4 * H)),
            rep((1, 4 * H)),
            rep((H, F1)), rep((1, F1)),
            rep((F1, F2)), rep((1, F2)),
            rep((F2, A)), rep((1, A)),
        ],
        out_specs=pl.BlockSpec((block_b, T, A), lambda b: (b, 0, 0)),
        scratch_shapes=[pltpu.VMEM((block_b, T, 4 * H), jnp.float32)],
        compiler_params=pltpu.CompilerParams(
            dimension_semantics=("parallel",)),
        cost_estimate=pl.CostEstimate(
            flops=flops,
            transcendentals=transcendentals,
            bytes_accessed=bytes_accessed),
    )(state,
      params["w_ih"], params["w_hh"], params["b"],
      params["w1"], params["b1"],
      params["w2"], params["b2"],
      params["wpi"], params["bpi"])


def _reference_forward(state, params):
    """Pure-JAX reference matching PyTorch LSTM/Linear/LeakyReLU/Softsign."""
    B, T, D = state.shape
    w_ih, w_hh, b = params["w_ih"], params["w_hh"], params["b"]
    H = w_hh.shape[0]

    def cell(carry, x_t):
        h, c = carry
        g = x_t @ w_ih + h @ w_hh + b[0]
        i = jax.nn.sigmoid(g[:, 0 * H:1 * H])
        f = jax.nn.sigmoid(g[:, 1 * H:2 * H])
        gg = jnp.tanh(g[:, 2 * H:3 * H])
        o = jax.nn.sigmoid(g[:, 3 * H:4 * H])
        c = f * c + i * gg
        h = o * jnp.tanh(c)
        return (h, c), h

    h0 = jnp.zeros((B, H), jnp.float32)
    (_, _), hs = lax.scan(cell, (h0, h0), jnp.transpose(state, (1, 0, 2)))
    hs = jnp.transpose(hs, (1, 0, 2))     # (B, T, H)

    def leaky(x):
        return jnp.where(x > 0, x, 0.01 * x)

    z1 = leaky(hs @ params["w1"] + params["b1"][0])
    z2 = leaky(z1 @ params["w2"] + params["b2"][0])
    zp = z2 @ params["wpi"] + params["bpi"][0]
    return zp / (1.0 + jnp.abs(zp))


if __name__ == "__main__":
    # Small shapes consistent with the module.
    B, T = 2, 8                 # batch, sequence length
    input_dims = 16             # per-step observation dim
    lstm_hidden = 32            # 4H = 128 -> one lane-dense gate matmul
    fc1_dims, fc2_dims = 64, 64
    n_actions = 4

    key = jax.random.PRNGKey(0)
    k_params, k_x = jax.random.split(key)

    params = make_actor_params(k_params, input_dims, lstm_hidden,
                               fc1_dims, fc2_dims, n_actions)
    state = jax.random.normal(k_x, (B, T, input_dims), dtype=jnp.float32)

    out = jax.block_until_ready(actor_forward(state, params))
    ref = jax.block_until_ready(_reference_forward(state, params))

    assert out.shape == (B, T, n_actions)
    # Exact f32 everywhere (no approx reciprocal any more); tolerance only
    # covers MXU-vs-XLA reduction-order and transcendental rounding noise.
    assert jnp.allclose(out, ref, atol=1e-4, rtol=1e-4)

    print("KERNEL_OK")
</pallas_src>

<mosaic_0001>
module attributes {stable_mosaic.version = 11 : i64} {
  func.func @actor_kernel(%arg0: i32, %arg1: memref<2x8x16xf32, #tpu.memory_space<vmem>>, %arg2: memref<16x128xf32, #tpu.memory_space<vmem>>, %arg3: memref<32x128xf32, #tpu.memory_space<vmem>>, %arg4: memref<1x128xf32, #tpu.memory_space<vmem>>, %arg5: memref<32x64xf32, #tpu.memory_space<vmem>>, %arg6: memref<1x64xf32, #tpu.memory_space<vmem>>, %arg7: memref<64x64xf32, #tpu.memory_space<vmem>>, %arg8: memref<1x64xf32, #tpu.memory_space<vmem>>, %arg9: memref<64x4xf32, #tpu.memory_space<vmem>>, %arg10: memref<1x4xf32, #tpu.memory_space<vmem>>, %arg11: memref<2x8x4xf32, #tpu.memory_space<vmem>>, %arg12: memref<2x8x128xf32, #tpu.memory_space<vmem>>) attributes {dimension_semantics = [#tpu.dimension_semantics<parallel>], iteration_bounds = array<i64: 1>, scalar_prefetch = 0 : i64, scratch_operands = 1 : i64, tpu.core_type = #tpu.core_type<tc>, window_params = [{transform_indices = @transform_0, window_bounds = array<i64: 2, 8, 16>}, {pipeline_mode = #tpu.pipeline_mode<synchronous>, transform_indices = @transform_1, window_bounds = array<i64: 16, 128>}, {pipeline_mode = #tpu.pipeline_mode<synchronous>, transform_indices = @transform_2, window_bounds = array<i64: 32, 128>}, {pipeline_mode = #tpu.pipeline_mode<synchronous>, transform_indices = @transform_3, window_bounds = array<i64: 1, 128>}, {pipeline_mode = #tpu.pipeline_mode<synchronous>, transform_indices = @transform_4, window_bounds = array<i64: 32, 64>}, {pipeline_mode = #tpu.pipeline_mode<synchronous>, transform_indices = @transform_5, window_bounds = array<i64: 1, 64>}, {pipeline_mode = #tpu.pipeline_mode<synchronous>, transform_indices = @transform_6, window_bounds = array<i64: 64, 64>}, {pipeline_mode = #tpu.pipeline_mode<synchronous>, transform_indices = @transform_7, window_bounds = array<i64: 1, 64>}, {pipeline_mode = #tpu.pipeline_mode<synchronous>, transform_indices = @transform_8, window_bounds = array<i64: 64, 4>}, {pipeline_mode = #tpu.pipeline_mode<synchronous>, transform_indices = @transform_9, window_bounds = array<i64: 1, 4>}, {transform_indices = @transform_10, window_bounds = array<i64: 2, 8, 4>}]} {
    %c0 = arith.constant 0 : index
    %c0_0 = arith.constant 0 : index
    %c0_1 = arith.constant 0 : index
    %0 = vector.load %arg1[%c0, %c0_0, %c0_1] : memref<2x8x16xf32, #tpu.memory_space<vmem>>, vector<2x8x16xf32>
    %1 = vector.shape_cast %0 : vector<2x8x16xf32> to vector<16x16xf32>
    %c0_2 = arith.constant 0 : index
    %c0_3 = arith.constant 0 : index
    %2 = vector.load %arg2[%c0_2, %c0_3] : memref<16x128xf32, #tpu.memory_space<vmem>>, vector<16x128xf32>
    %cst = arith.constant dense<0.000000e+00> : vector<16x128xf32>
    %3 = tpu.matmul %1, %2, %cst {dimension_numbers = #tpu.dot_dimension_numbers<[1], [0], [0], [1], [0, 0, 1, 1], [], []>} : vector<16x16xf32>, vector<16x128xf32>, vector<16x128xf32> -> vector<16x128xf32>
    %c0_4 = arith.constant 0 : index
    %c0_5 = arith.constant 0 : index
    %4 = vector.load %arg4[%c0_4, %c0_5] : memref<1x128xf32, #tpu.memory_space<vmem>>, vector<1x128xf32>
    %5 = vector.broadcast %4 : vector<1x128xf32> to vector<16x128xf32>
    %6 = arith.addf %3, %5 : vector<16x128xf32>
    %7 = vector.shape_cast %6 : vector<16x128xf32> to vector<2x8x128xf32>
    %c0_6 = arith.constant 0 : index
    %c0_7 = arith.constant 0 : index
    %c0_8 = arith.constant 0 : index
    %8 = vector.load %arg12[%c0_6, %c0_7, %c0_8] : memref<2x8x128xf32, #tpu.memory_space<vmem>>, vector<2x8x128xf32>
    tpu.vector_store %arg12[%c0_6, %c0_7, %c0_8], %7 {strides = array<i32>} : memref<2x8x128xf32, #tpu.memory_space<vmem>>, vector<2x8x128xf32>,
    %c0_9 = arith.constant 0 : index
    %c0_10 = arith.constant 0 : index
    %9 = vector.load %arg3[%c0_9, %c0_10] : memref<32x128xf32, #tpu.memory_space<vmem>>, vector<32x128xf32>
    %cst_11 = arith.constant 0.000000e+00 : f32
    %10 = vector.broadcast %cst_11 : f32 to vector<2x32xf32>
    %cst_12 = arith.constant 0.000000e+00 : f32
    %11 = vector.broadcast %cst_12 : f32 to vector<2x32xf32>
    %c0_13 = arith.constant 0 : index
    %c0_14 = arith.constant 0 : index
    %c0_15 = arith.constant 0 : index
    %12 = vector.load %arg12[%c0_13, %c0_14, %c0_15] : memref<2x8x128xf32, #tpu.memory_space<vmem>>, vector<2x1x128xf32>
    %13 = vector.shape_cast %12 : vector<2x1x128xf32> to vector<2x128xf32>
    %cst_16 = arith.constant dense<0.000000e+00> : vector<2x128xf32>
    %14 = tpu.matmul %10, %9, %cst_16 {dimension_numbers = #tpu.dot_dimension_numbers<[1], [0], [0], [1], [0, 0, 1, 1], [], []>} : vector<2x32xf32>, vector<32x128xf32>, vector<2x128xf32> -> vector<2x128xf32>
    %15 = arith.addf %13, %14 : vector<2x128xf32>
    %16 = vector.extract_strided_slice %15 {offsets = [0, 0], sizes = [2, 32], strides = [1, 1]} : vector<2x128xf32> to vector<2x32xf32>
    %17 = arith.negf %16 : vector<2x32xf32>
    %18 = math.exp %17 : vector<2x32xf32>
    %cst_17 = arith.constant 1.000000e+00 : f32
    %19 = vector.broadcast %cst_17 : f32 to vector<2x32xf32>
    %20 = arith.addf %19, %18 : vector<2x32xf32>
    %21 = arith.divf %19, %20 : vector<2x32xf32>
    %22 = vector.extract_strided_slice %15 {offsets = [0, 32], sizes = [2, 32], strides = [1, 1]} : vector<2x128xf32> to vector<2x32xf32>
    %23 = arith.negf %22 : vector<2x32xf32>
    %24 = math.exp %23 : vector<2x32xf32>
    %cst_18 = arith.constant 1.000000e+00 : f32
    %25 = vector.broadcast %cst_18 : f32 to vector<2x32xf32>
    %26 = arith.addf %25, %24 : vector<2x32xf32>
    %27 = arith.divf %25, %26 : vector<2x32xf32>
    %28 = vector.extract_strided_slice %15 {offsets = [0, 64], sizes = [2, 32], strides = [1, 1]} : vector<2x128xf32> to vector<2x32xf32>
    %29 = math.tanh %28 : vector<2x32xf32>
    %30 = vector.extract_strided_slice %15 {offsets = [0, 96], sizes = [2, 32], strides = [1, 1]} : vector<2x128xf32> to vector<2x32xf32>
    %31 = arith.negf %30 : vector<2x32xf32>
    %32 = math.exp %31 : vector<2x32xf32>
    %cst_19 = arith.constant 1.000000e+00 : f32
    %33 = vector.broadcast %cst_19 : f32 to vector<2x32xf32>
    %34 = arith.addf %33, %32 : vector<2x32xf32>
    %35 = arith.divf %33, %34 : vector<2x32xf32>
    %36 = arith.mulf %27, %11 : vector<2x32xf32>
    %37 = arith.mulf %21, %29 : vector<2x32xf32>
    %38 = arith.addf %36, %37 : vector<2x32xf32>
    %39 = math.tanh %38 : vector<2x32xf32>
    %40 = arith.mulf %35, %39 : vector<2x32xf32>
    %c0_20 = arith.constant 0 : index
    %c1 = arith.constant 1 : index
    %c0_21 = arith.constant 0 : index
    %41 = vector.load %arg12[%c0_20, %c1, %c0_21] : memref<2x8x128xf32, #tpu.memory_space<vmem>>, vector<2x1x128xf32>
    %42 = vector.shape_cast %41 : vector<2x1x128xf32> to vector<2x128xf32>
    %cst_22 = arith.constant dense<0.000000e+00> : vector<2x128xf32>
    %43 = tpu.matmul %40, %9, %cst_22 {dimension_numbers = #tpu.dot_dimension_numbers<[1], [0], [0], [1], [0, 0, 1, 1], [], []>} : vector<2x32xf32>, vector<32x128xf32>, vector<2x128xf32> -> vector<2x128xf32>
    %44 = arith.addf %42, %43 : vector<2x128xf32>
    %45 = vector.extract_strided_slice %44 {offsets = [0, 0], sizes = [2, 32], strides = [1, 1]} : vector<2x128xf32> to vector<2x32xf32>
    %46 = arith.negf %45 : vector<2x32xf32>
    %47 = math.exp %46 : vector<2x32xf32>
    %cst_23 = arith.constant 1.000000e+00 : f32
    %48 = vector.broadcast %cst_23 : f32 to vector<2x32xf32>
    %49 = arith.addf %48, %47 : vector<2x32xf32>
    %50 = arith.divf %48, %49 : vector<2x32xf32>
    %51 = vector.extract_strided_slice %44 {offsets = [0, 32], sizes = [2, 32], strides = [1, 1]} : vector<2x128xf32> to vector<2x32xf32>
    %52 = arith.negf %51 : vector<2x32xf32>
    %53 = math.exp %52 : vector<2x32xf32>
    %cst_24 = arith.constant 1.000000e+00 : f32
    %54 = vector.broadcast %cst_24 : f32 to vector<2x32xf32>
    %55 = arith.addf %54, %53 : vector<2x32xf32>
    %56 = arith.divf %54, %55 : vector<2x32xf32>
    %57 = vector.extract_strided_slice %44 {offsets = [0, 64], sizes = [2, 32], strides = [1, 1]} : vector<2x128xf32> to vector<2x32xf32>
    %58 = math.tanh %57 : vector<2x32xf32>
    %59 = vector.extract_strided_slice %44 {offsets = [0, 96], sizes = [2, 32], strides = [1, 1]} : vector<2x128xf32> to vector<2x32xf32>
    %60 = arith.negf %59 : vector<2x32xf32>
    %61 = math.exp %60 : vector<2x32xf32>
    %cst_25 = arith.constant 1.000000e+00 : f32
    %62 = vector.broadcast %cst_25 : f32 to vector<2x32xf32>
    %63 = arith.addf %62, %61 : vector<2x32xf32>
    %64 = arith.divf %62, %63 : vector<2x32xf32>
    %65 = arith.mulf %56, %38 : vector<2x32xf32>
    %66 = arith.mulf %50, %58 : vector<2x32xf32>
    %67 = arith.addf %65, %66 : vector<2x32xf32>
    %68 = math.tanh %67 : vector<2x32xf32>
    %69 = arith.mulf %64, %68 : vector<2x32xf32>
    %c0_26 = arith.constant 0 : index
    %c2 = arith.constant 2 : index
    %c0_27 = arith.constant 0 : index
    %70 = vector.load %arg12[%c0_26, %c2, %c0_27] : memref<2x8x128xf32, #tpu.memory_space<vmem>>, vector<2x1x128xf32>
    %71 = vector.shape_cast %70 : vector<2x1x128xf32> to vector<2x128xf32>
    %cst_28 = arith.constant dense<0.000000e+00> : vector<2x128xf32>
    %72 = tpu.matmul %69, %9, %cst_28 {dimension_numbers = #tpu.dot_dimension_numbers<[1], [0], [0], [1], [0, 0, 1, 1], [], []>} : vector<2x32xf32>, vector<32x128xf32>, vector<2x128xf32> -> vector<2x128xf32>
    %73 = arith.addf %71, %72 : vector<2x128xf32>
    %74 = vector.extract_strided_slice %73 {offsets = [0, 0], sizes = [2, 32], strides = [1, 1]} : vector<2x128xf32> to vector<2x32xf32>
    %75 = arith.negf %74 : vector<2x32xf32>
    %76 = math.exp %75 : vector<2x32xf32>
    %cst_29 = arith.constant 1.000000e+00 : f32
    %77 = vector.broadcast %cst_29 : f32 to vector<2x32xf32>
    %78 = arith.addf %77, %76 : vector<2x32xf32>
    %79 = arith.divf %77, %78 : vector<2x32xf32>
    %80 = vector.extract_strided_slice %73 {offsets = [0, 32], sizes = [2, 32], strides = [1, 1]} : vector<2x128xf32> to vector<2x32xf32>
    %81 = arith.negf %80 : vector<2x32xf32>
    %82 = math.exp %81 : vector<2x32xf32>
    %cst_30 = arith.constant 1.000000e+00 : f32
    %83 = vector.broadcast %cst_30 : f32 to vector<2x32xf32>
    %84 = arith.addf %83, %82 : vector<2x32xf32>
    %85 = arith.divf %83, %84 : vector<2x32xf32>
    %86 = vector.extract_strided_slice %73 {offsets = [0, 64], sizes = [2, 32], strides = [1, 1]} : vector<2x128xf32> to vector<2x32xf32>
    %87 = math.tanh %86 : vector<2x32xf32>
    %88 = vector.extract_strided_slice %73 {offsets = [0, 96], sizes = [2, 32], strides = [1, 1]} : vector<2x128xf32> to vector<2x32xf32>
    %89 = arith.negf %88 : vector<2x32xf32>
    %90 = math.exp %89 : vector<2x32xf32>
    %cst_31 = arith.constant 1.000000e+00 : f32
    %91 = vector.broadcast %cst_31 : f32 to vector<2x32xf32>
    %92 = arith.addf %91, %90 : vector<2x32xf32>
    %93 = arith.divf %91, %92 : vector<2x32xf32>
    %94 = arith.mulf %85, %67 : vector<2x32xf32>
    %95 = arith.mulf %79, %87 : vector<2x32xf32>
    %96 = arith.addf %94, %95 : vector<2x32xf32>
    %97 = math.tanh %96 : vector<2x32xf32>
    %98 = arith.mulf %93, %97 : vector<2x32xf32>
    %c0_32 = arith.constant 0 : index
    %c3 = arith.constant 3 : index
    %c0_33 = arith.constant 0 : index
    %99 = vector.load %arg12[%c0_32, %c3, %c0_33] : memref<2x8x128xf32, #tpu.memory_space<vmem>>, vector<2x1x128xf32>
    %100 = vector.shape_cast %99 : vector<2x1x128xf32> to vector<2x128xf32>
    %cst_34 = arith.constant dense<0.000000e+00> : vector<2x128xf32>
    %101 = tpu.matmul %98, %9, %cst_34 {dimension_numbers = #tpu.dot_dimension_numbers<[1], [0], [0], [1], [0, 0, 1, 1], [], []>} : vector<2x32xf32>, vector<32x128xf32>, vector<2x128xf32> -> vector<2x128xf32>
    %102 = arith.addf %100, %101 : vector<2x128xf32>
    %103 = vector.extract_strided_slice %102 {offsets = [0, 0], sizes = [2, 32], strides = [1, 1]} : vector<2x128xf32> to vector<2x32xf32>
    %104 = arith.negf %103 : vector<2x32xf32>
    %105 = math.exp %104 : vector<2x32xf32>
    %cst_35 = arith.constant 1.000000e+00 : f32
    %106 = vector.broadcast %cst_35 : f32 to vector<2x32xf32>
    %107 = arith.addf %106, %105 : vector<2x32xf32>
    %108 = arith.divf %106, %107 : vector<2x32xf32>
    %109 = vector.extract_strided_slice %102 {offsets = [0, 32], sizes = [2, 32], strides = [1, 1]} : vector<2x128xf32> to vector<2x32xf32>
    %110 = arith.negf %109 : vector<2x32xf32>
    %111 = math.exp %110 : vector<2x32xf32>
    %cst_36 = arith.constant 1.000000e+00 : f32
    %112 = vector.broadcast %cst_36 : f32 to vector<2x32xf32>
    %113 = arith.addf %112, %111 : vector<2x32xf32>
    %114 = arith.divf %112, %113 : vector<2x32xf32>
    %115 = vector.extract_strided_slice %102 {offsets = [0, 64], sizes = [2, 32], strides = [1, 1]} : vector<2x128xf32> to vector<2x32xf32>
    %116 = math.tanh %115 : vector<2x32xf32>
    %117 = vector.extract_strided_slice %102 {offsets = [0, 96], sizes = [2, 32], strides = [1, 1]} : vector<2x128xf32> to vector<2x32xf32>
    %118 = arith.negf %117 : vector<2x32xf32>
    %119 = math.exp %118 : vector<2x32xf32>
    %cst_37 = arith.constant 1.000000e+00 : f32
    %120 = vector.broadcast %cst_37 : f32 to vector<2x32xf32>
    %121 = arith.addf %120, %119 : vector<2x32xf32>
    %122 = arith.divf %120, %121 : vector<2x32xf32>
    %123 = arith.mulf %114, %96 : vector<2x32xf32>
    %124 = arith.mulf %108, %116 : vector<2x32xf32>
    %125 = arith.addf %123, %124 : vector<2x32xf32>
    %126 = math.tanh %125 : vector<2x32xf32>
    %127 = arith.mulf %122, %126 : vector<2x32xf32>
    %c0_38 = arith.constant 0 : index
    %c4 = arith.constant 4 : index
    %c0_39 = arith.constant 0 : index
    %128 = vector.load %arg12[%c0_38, %c4, %c0_39] : memref<2x8x128xf32, #tpu.memory_space<vmem>>, vector<2x1x128xf32>
    %129 = vector.shape_cast %128 : vector<2x1x128xf32> to vector<2x128xf32>
    %cst_40 = arith.constant dense<0.000000e+00> : vector<2x128xf32>
    %130 = tpu.matmul %127, %9, %cst_40 {dimension_numbers = #tpu.dot_dimension_numbers<[1], [0], [0], [1], [0, 0, 1, 1], [], []>} : vector<2x32xf32>, vector<32x128xf32>, vector<2x128xf32> -> vector<2x128xf32>
    %131 = arith.addf %129, %130 : vector<2x128xf32>
    %132 = vector.extract_strided_slice %131 {offsets = [0, 0], sizes = [2, 32], strides = [1, 1]} : vector<2x128xf32> to vector<2x32xf32>
    %133 = arith.negf %132 : vector<2x32xf32>
    %134 = math.exp %133 : vector<2x32xf32>
    %cst_41 = arith.constant 1.000000e+00 : f32
    %135 = vector.broadcast %cst_41 : f32 to vector<2x32xf32>
    %136 = arith.addf %135, %134 : vector<2x32xf32>
    %137 = arith.divf %135, %136 : vector<2x32xf32>
    %138 = vector.extract_strided_slice %131 {offsets = [0, 32], sizes = [2, 32], strides = [1, 1]} : vector<2x128xf32> to vector<2x32xf32>
    %139 = arith.negf %138 : vector<2x32xf32>
    %140 = math.exp %139 : vector<2x32xf32>
    %cst_42 = arith.constant 1.000000e+00 : f32
    %141 = vector.broadcast %cst_42 : f32 to vector<2x32xf32>
    %142 = arith.addf %141, %140 : vector<2x32xf32>
    %143 = arith.divf %141, %142 : vector<2x32xf32>
    %144 = vector.extract_strided_slice %131 {offsets = [0, 64], sizes = [2, 32], strides = [1, 1]} : vector<2x128xf32> to vector<2x32xf32>
    %145 = math.tanh %144 : vector<2x32xf32>
    %146 = vector.extract_strided_slice %131 {offsets = [0, 96], sizes = [2, 32], strides = [1, 1]} : vector<2x128xf32> to vector<2x32xf32>
    %147 = arith.negf %146 : vector<2x32xf32>
    %148 = math.exp %147 : vector<2x32xf32>
    %cst_43 = arith.constant 1.000000e+00 : f32
    %149 = vector.broadcast %cst_43 : f32 to vector<2x32xf32>
    %150 = arith.addf %149, %148 : vector<2x32xf32>
    %151 = arith.divf %149, %150 : vector<2x32xf32>
    %152 = arith.mulf %143, %125 : vector<2x32xf32>
    %153 = arith.mulf %137, %145 : vector<2x32xf32>
    %154 = arith.addf %152, %153 : vector<2x32xf32>
    %155 = math.tanh %154 : vector<2x32xf32>
    %156 = arith.mulf %151, %155 : vector<2x32xf32>
    %c0_44 = arith.constant 0 : index
    %c5 = arith.constant 5 : index
    %c0_45 = arith.constant 0 : index
    %157 = vector.load %arg12[%c0_44, %c5, %c0_45] : memref<2x8x128xf32, #tpu.memory_space<vmem>>, vector<2x1x128xf32>
    %158 = vector.shape_cast %157 : vector<2x1x128xf32> to vector<2x128xf32>
    %cst_46 = arith.constant dense<0.000000e+00> : vector<2x128xf32>
    %159 = tpu.matmul %156, %9, %cst_46 {dimension_numbers = #tpu.dot_dimension_numbers<[1], [0], [0], [1], [0, 0, 1, 1], [], []>} : vector<2x32xf32>, vector<32x128xf32>, vector<2x128xf32> -> vector<2x128xf32>
    %160 = arith.addf %158, %159 : vector<2x128xf32>
    %161 = vector.extract_strided_slice %160 {offsets = [0, 0], sizes = [2, 32], strides = [1, 1]} : vector<2x128xf32> to vector<2x32xf32>
    %162 = arith.negf %161 : vector<2x32xf32>
    %163 = math.exp %162 : vector<2x32xf32>
    %cst_47 = arith.constant 1.000000e+00 : f32
    %164 = vector.broadcast %cst_47 : f32 to vector<2x32xf32>
    %165 = arith.addf %164, %163 : vector<2x32xf32>
    %166 = arith.divf %164, %165 : vector<2x32xf32>
    %167 = vector.extract_strided_slice %160 {offsets = [0, 32], sizes = [2, 32], strides = [1, 1]} : vector<2x128xf32> to vector<2x32xf32>
    %168 = arith.negf %167 : vector<2x32xf32>
    %169 = math.exp %168 : vector<2x32xf32>
    %cst_48 = arith.constant 1.000000e+00 : f32
    %170 = vector.broadcast %cst_48 : f32 to vector<2x32xf32>
    %171 = arith.addf %170, %169 : vector<2x32xf32>
    %172 = arith.divf %170, %171 : vector<2x32xf32>
    %173 = vector.extract_strided_slice %160 {offsets = [0, 64], sizes = [2, 32], strides = [1, 1]} : vector<2x128xf32> to vector<2x32xf32>
    %174 = math.tanh %173 : vector<2x32xf32>
    %175 = vector.extract_strided_slice %160 {offsets = [0, 96], sizes = [2, 32], strides = [1, 1]} : vector<2x128xf32> to vector<2x32xf32>
    %176 = arith.negf %175 : vector<2x32xf32>
    %177 = math.exp %176 : vector<2x32xf32>
    %cst_49 = arith.constant 1.000000e+00 : f32
    %178 = vector.broadcast %cst_49 : f32 to vector<2x32xf32>
    %179 = arith.addf %178, %177 : vector<2x32xf32>
    %180 = arith.divf %178, %179 : vector<2x32xf32>
    %181 = arith.mulf %172, %154 : vector<2x32xf32>
    %182 = arith.mulf %166, %174 : vector<2x32xf32>
    %183 = arith.addf %181, %182 : vector<2x32xf32>
    %184 = math.tanh %183 : vector<2x32xf32>
    %185 = arith.mulf %180, %184 : vector<2x32xf32>
    %c0_50 = arith.constant 0 : index
    %c6 = arith.constant 6 : index
    %c0_51 = arith.constant 0 : index
    %186 = vector.load %arg12[%c0_50, %c6, %c0_51] : memref<2x8x128xf32, #tpu.memory_space<vmem>>, vector<2x1x128xf32>
    %187 = vector.shape_cast %186 : vector<2x1x128xf32> to vector<2x128xf32>
    %cst_52 = arith.constant dense<0.000000e+00> : vector<2x128xf32>
    %188 = tpu.matmul %185, %9, %cst_52 {dimension_numbers = #tpu.dot_dimension_numbers<[1], [0], [0], [1], [0, 0, 1, 1], [], []>} : vector<2x32xf32>, vector<32x128xf32>, vector<2x128xf32> -> vector<2x128xf32>
    %189 = arith.addf %187, %188 : vector<2x128xf32>
    %190 = vector.extract_strided_slice %189 {offsets = [0, 0], sizes = [2, 32], strides = [1, 1]} : vector<2x128xf32> to vector<2x32xf32>
    %191 = arith.negf %190 : vector<2x32xf32>
    %192 = math.exp %191 : vector<2x32xf32>
    %cst_53 = arith.constant 1.000000e+00 : f32
    %193 = vector.broadcast %cst_53 : f32 to vector<2x32xf32>
    %194 = arith.addf %193, %192 : vector<2x32xf32>
    %195 = arith.divf %193, %194 : vector<2x32xf32>
    %196 = vector.extract_strided_slice %189 {offsets = [0, 32], sizes = [2, 32], strides = [1, 1]} : vector<2x128xf32> to vector<2x32xf32>
    %197 = arith.negf %196 : vector<2x32xf32>
    %198 = math.exp %197 : vector<2x32xf32>
    %cst_54 = arith.constant 1.000000e+00 : f32
    %199 = vector.broadcast %cst_54 : f32 to vector<2x32xf32>
    %200 = arith.addf %199, %198 : vector<2x32xf32>
    %201 = arith.divf %199, %200 : vector<2x32xf32>
    %202 = vector.extract_strided_slice %189 {offsets = [0, 64], sizes = [2, 32], strides = [1, 1]} : vector<2x128xf32> to vector<2x32xf32>
    %203 = math.tanh %202 : vector<2x32xf32>
    %204 = vector.extract_strided_slice %189 {offsets = [0, 96], sizes = [2, 32], strides = [1, 1]} : vector<2x128xf32> to vector<2x32xf32>
    %205 = arith.negf %204 : vector<2x32xf32>
    %206 = math.exp %205 : vector<2x32xf32>
    %cst_55 = arith.constant 1.000000e+00 : f32
    %207 = vector.broadcast %cst_55 : f32 to vector<2x32xf32>
    %208 = arith.addf %207, %206 : vector<2x32xf32>
    %209 = arith.divf %207, %208 : vector<2x32xf32>
    %210 = arith.mulf %201, %183 : vector<2x32xf32>
    %211 = arith.mulf %195, %203 : vector<2x32xf32>
    %212 = arith.addf %210, %211 : vector<2x32xf32>
    %213 = math.tanh %212 : vector<2x32xf32>
    %214 = arith.mulf %209, %213 : vector<2x32xf32>
    %c0_56 = arith.constant 0 : index
    %c7 = arith.constant 7 : index
    %c0_57 = arith.constant 0 : index
    %215 = vector.load %arg12[%c0_56, %c7, %c0_57] : memref<2x8x128xf32, #tpu.memory_space<vmem>>, vector<2x1x128xf32>
    %216 = vector.shape_cast %215 : vector<2x1x128xf32> to vector<2x128xf32>
    %cst_58 = arith.constant dense<0.000000e+00> : vector<2x128xf32>
    %217 = tpu.matmul %214, %9, %cst_58 {dimension_numbers = #tpu.dot_dimension_numbers<[1], [0], [0], [1], [0, 0, 1, 1], [], []>} : vector<2x32xf32>, vector<32x128xf32>, vector<2x128xf32> -> vector<2x128xf32>
    %218 = arith.addf %216, %217 : vector<2x128xf32>
    %219 = vector.extract_strided_slice %218 {offsets = [0, 0], sizes = [2, 32], strides = [1, 1]} : vector<2x128xf32> to vector<2x32xf32>
    %220 = arith.negf %219 : vector<2x32xf32>
    %221 = math.exp %220 : vector<2x32xf32>
    %cst_59 = arith.constant 1.000000e+00 : f32
    %222 = vector.broadcast %cst_59 : f32 to vector<2x32xf32>
    %223 = arith.addf %222, %221 : vector<2x32xf32>
    %224 = arith.divf %222, %223 : vector<2x32xf32>
    %225 = vector.extract_strided_slice %218 {offsets = [0, 32], sizes = [2, 32], strides = [1, 1]} : vector<2x128xf32> to vector<2x32xf32>
    %226 = arith.negf %225 : vector<2x32xf32>
    %227 = math.exp %226 : vector<2x32xf32>
    %cst_60 = arith.constant 1.000000e+00 : f32
    %228 = vector.broadcast %cst_60 : f32 to vector<2x32xf32>
    %229 = arith.addf %228, %227 : vector<2x32xf32>
    %230 = arith.divf %228, %229 : vector<2x32xf32>
    %231 = vector.extract_strided_slice %218 {offsets = [0, 64], sizes = [2, 32], strides = [1, 1]} : vector<2x128xf32> to vector<2x32xf32>
    %232 = math.tanh %231 : vector<2x32xf32>
    %233 = vector.extract_strided_slice %218 {offsets = [0, 96], sizes = [2, 32], strides = [1, 1]} : vector<2x128xf32> to vector<2x32xf32>
    %234 = arith.negf %233 : vector<2x32xf32>
    %235 = math.exp %234 : vector<2x32xf32>
    %cst_61 = arith.constant 1.000000e+00 : f32
    %236 = vector.broadcast %cst_61 : f32 to vector<2x32xf32>
    %237 = arith.addf %236, %235 : vector<2x32xf32>
    %238 = arith.divf %236, %237 : vector<2x32xf32>
    %239 = arith.mulf %230, %212 : vector<2x32xf32>
    %240 = arith.mulf %224, %232 : vector<2x32xf32>
    %241 = arith.addf %239, %240 : vector<2x32xf32>
    %242 = math.tanh %241 : vector<2x32xf32>
    %243 = arith.mulf %238, %242 : vector<2x32xf32>
    %244 = vector.shape_cast %40 : vector<2x32xf32> to vector<2x1x32xf32>
    %245 = vector.shape_cast %69 : vector<2x32xf32> to vector<2x1x32xf32>
    %246 = vector.shape_cast %98 : vector<2x32xf32> to vector<2x1x32xf32>
    %247 = vector.shape_cast %127 : vector<2x32xf32> to vector<2x1x32xf32>
    %248 = vector.shape_cast %156 : vector<2x32xf32> to vector<2x1x32xf32>
    %249 = vector.shape_cast %185 : vector<2x32xf32> to vector<2x1x32xf32>
    %250 = vector.shape_cast %214 : vector<2x32xf32> to vector<2x1x32xf32>
    %251 = vector.shape_cast %243 : vector<2x32xf32> to vector<2x1x32xf32>
    %252 = tpu.concatenate %244, %245, %246, %247, %248, %249, %250, %251 in 1 : vector<2x1x32xf32>, vector<2x1x32xf32>, vector<2x1x32xf32>, vector<2x1x32xf32>, vector<2x1x32xf32>, vector<2x1x32xf32>, vector<2x1x32xf32>, vector<2x1x32xf32> -> vector<2x8x32xf32>
    %253 = vector.shape_cast %252 : vector<2x8x32xf32> to vector<16x32xf32>
    %c0_62 = arith.constant 0 : index
    %c0_63 = arith.constant 0 : index
    %254 = vector.load %arg5[%c0_62, %c0_63] : memref<32x64xf32, #tpu.memory_space<vmem>>, vector<32x64xf32>
    %cst_64 = arith.constant dense<0.000000e+00> : vector<16x64xf32>
    %255 = tpu.matmul %253, %254, %cst_64 {dimension_numbers = #tpu.dot_dimension_numbers<[1], [0], [0], [1], [0, 0, 1, 1], [], []>} : vector<16x32xf32>, vector<32x64xf32>, vector<16x64xf32> -> vector<16x64xf32>
    %c0_65 = arith.constant 0 : index
    %c0_66 = arith.constant 0 : index
    %256 = vector.load %arg6[%c0_65, %c0_66] : memref<1x64xf32, #tpu.memory_space<vmem>>, vector<1x64xf32>
    %257 = vector.broadcast %256 : vector<1x64xf32> to vector<16x64xf32>
    %258 = arith.addf %255, %257 : vector<16x64xf32>
    %cst_67 = arith.constant 0.000000e+00 : f32
    %259 = vector.broadcast %cst_67 : f32 to vector<16x64xf32>
    %260 = arith.cmpf ogt, %258, %259 : vector<16x64xf32>
    %cst_68 = arith.constant 0.00999999977 : f32
    %261 = vector.broadcast %cst_68 : f32 to vector<16x64xf32>
    %262 = arith.mulf %261, %258 : vector<16x64xf32>
    %263 = arith.select %260, %258, %262 : vector<16x64xi1>, vector<16x64xf32>
    %c0_69 = arith.constant 0 : index
    %c0_70 = arith.constant 0 : index
    %264 = vector.load %arg7[%c0_69, %c0_70] : memref<64x64xf32, #tpu.memory_space<vmem>>, vector<64x64xf32>
    %cst_71 = arith.constant dense<0.000000e+00> : vector<16x64xf32>
    %265 = tpu.matmul %263, %264, %cst_71 {dimension_numbers = #tpu.dot_dimension_numbers<[1], [0], [0], [1], [0, 0, 1, 1], [], []>} : vector<16x64xf32>, vector<64x64xf32>, vector<16x64xf32> -> vector<16x64xf32>
    %c0_72 = arith.constant 0 : index
    %c0_73 = arith.constant 0 : index
    %266 = vector.load %arg8[%c0_72, %c0_73] : memref<1x64xf32, #tpu.memory_space<vmem>>, vector<1x64xf32>
    %267 = vector.broadcast %266 : vector<1x64xf32> to vector<16x64xf32>
    %268 = arith.addf %265, %267 : vector<16x64xf32>
    %cst_74 = arith.constant 0.000000e+00 : f32
    %269 = vector.broadcast %cst_74 : f32 to vector<16x64xf32>
    %270 = arith.cmpf ogt, %268, %269 : vector<16x64xf32>
    %cst_75 = arith.constant 0.00999999977 : f32
    %271 = vector.broadcast %cst_75 : f32 to vector<16x64xf32>
    %272 = arith.mulf %271, %268 : vector<16x64xf32>
    %273 = arith.select %270, %268, %272 : vector<16x64xi1>, vector<16x64xf32>
    %c0_76 = arith.constant 0 : index
    %c0_77 = arith.constant 0 : index
    %274 = vector.load %arg9[%c0_76, %c0_77] : memref<64x4xf32, #tpu.memory_space<vmem>>, vector<64x4xf32>
    %cst_78 = arith.constant dense<0.000000e+00> : vector<16x4xf32>
    %275 = tpu.matmul %273, %274, %cst_78 {dimension_numbers = #tpu.dot_dimension_numbers<[1], [0], [0], [1], [0, 0, 1, 1], [], []>} : vector<16x64xf32>, vector<64x4xf32>, vector<16x4xf32> -> vector<16x4xf32>
    %c0_79 = arith.constant 0 : index
    %c0_80 = arith.constant 0 : index
    %276 = vector.load %arg10[%c0_79, %c0_80] : memref<1x4xf32, #tpu.memory_space<vmem>>, vector<1x4xf32>
    %277 = vector.broadcast %276 : vector<1x4xf32> to vector<16x4xf32>
    %278 = arith.addf %275, %277 : vector<16x4xf32>
    %279 = math.absf %278 : vector<16x4xf32>
    %cst_81 = arith.constant 1.000000e+00 : f32
    %280 = vector.broadcast %cst_81 : f32 to vector<16x4xf32>
    %281 = arith.addf %280, %279 : vector<16x4xf32>
    %282 = arith.divf %278, %281 : vector<16x4xf32>
    %283 = vector.shape_cast %282 : vector<16x4xf32> to vector<2x8x4xf32>
    %c0_82 = arith.constant 0 : index
    %c0_83 = arith.constant 0 : index
    %c0_84 = arith.constant 0 : index
    %284 = vector.load %arg11[%c0_82, %c0_83, %c0_84] : memref<2x8x4xf32, #tpu.memory_space<vmem>>, vector<2x8x4xf32>
    tpu.vector_store %arg11[%c0_82, %c0_83, %c0_84], %283 {strides = array<i32>} : memref<2x8x4xf32, #tpu.memory_space<vmem>>, vector<2x8x4xf32>,
    return
  }
  func.func @transform_0(%arg0: i32) -> (i32, i32, i32) {
    %c0_i32 = arith.constant 0 : i32
    %c0_i32_0 = arith.constant 0 : i32
    %c0_i32_1 = arith.constant 0 : i32
    return %arg0, %c0_i32, %c0_i32_0 : i32, i32, i32
  }
  func.func @transform_1(%arg0: i32) -> (i32, i32) {
    %c0_i32 = arith.constant 0 : i32
    %c0_i32_0 = arith.constant 0 : i32
    %c0_i32_1 = arith.constant 0 : i32
    return %c0_i32, %c0_i32_0 : i32, i32
  }
  func.func @transform_2(%arg0: i32) -> (i32, i32) {
    %c0_i32 = arith.constant 0 : i32
    %c0_i32_0 = arith.constant 0 : i32
    %c0_i32_1 = arith.constant 0 : i32
    return %c0_i32, %c0_i32_0 : i32, i32
  }
  func.func @transform_3(%arg0: i32) -> (i32, i32) {
    %c0_i32 = arith.constant 0 : i32
    %c0_i32_0 = arith.constant 0 : i32
    %c0_i32_1 = arith.constant 0 : i32
    return %c0_i32, %c0_i32_0 : i32, i32
  }
  func.func @transform_4(%arg0: i32) -> (i32, i32) {
    %c0_i32 = arith.constant 0 : i32
    %c0_i32_0 = arith.constant 0 : i32
    %c0_i32_1 = arith.constant 0 : i32
    return %c0_i32, %c0_i32_0 : i32, i32
  }
  func.func @transform_5(%arg0: i32) -> (i32, i32) {
    %c0_i32 = arith.constant 0 : i32
    %c0_i32_0 = arith.constant 0 : i32
    %c0_i32_1 = arith.constant 0 : i32
    return %c0_i32, %c0_i32_0 : i32, i32
  }
  func.func @transform_6(%arg0: i32) -> (i32, i32) {
    %c0_i32 = arith.constant 0 : i32
    %c0_i32_0 = arith.constant 0 : i32
    %c0_i32_1 = arith.constant 0 : i32
    return %c0_i32, %c0_i32_0 : i32, i32
  }
  func.func @transform_7(%arg0: i32) -> (i32, i32) {
    %c0_i32 = arith.constant 0 : i32
    %c0_i32_0 = arith.constant 0 : i32
    %c0_i32_1 = arith.constant 0 : i32
    return %c0_i32, %c0_i32_0 : i32, i32
  }
  func.func @transform_8(%arg0: i32) -> (i32, i32) {
    %c0_i32 = arith.constant 0 : i32
    %c0_i32_0 = arith.constant 0 : i32
    %c0_i32_1 = arith.constant 0 : i32
    return %c0_i32, %c0_i32_0 : i32, i32
  }
  func.func @transform_9(%arg0: i32) -> (i32, i32) {
    %c0_i32 = arith.constant 0 : i32
    %c0_i32_0 = arith.constant 0 : i32
    %c0_i32_1 = arith.constant 0 : i32
    return %c0_i32, %c0_i32_0 : i32, i32
  }
  func.func @transform_10(%arg0: i32) -> (i32, i32, i32) {
    %c0_i32 = arith.constant 0 : i32
    %c0_i32_0 = arith.constant 0 : i32
    %c0_i32_1 = arith.constant 0 : i32
    return %arg0, %c0_i32, %c0_i32_0 : i32, i32, i32
  }
}

</mosaic_0001>

<bundles_post_ra>
// kernel: tpu_custom_call.1
= control target key start
LH: loop header
LB: loop body
LE: loop exit
PB: predicated region body
PF: predicated region fallthrough
CT: control target
= control target key end

     0   :  { %15 = vsyncpa [#allocation4], 0  ;;  %s2528_s0 = inlined_call_operand.vmem [shape: f32[2,8,16], index: 0, kind: input, shape index: {}]   ;;  %s2529_s1 = inlined_call_operand.hbm [shape: f32[16,128], index: 1, kind: input, shape index: {}]   ;;  %s2530_s2 = inlined_call_operand.hbm [shape: f32[32,128], index: 2, kind: input, shape index: {}]   ;;  %s2531_s3 = inlined_call_operand.vmem [shape: f32[1,128], index: 3, kind: input, shape index: {}]   ;;  %s2532_s4 = inlined_call_operand.hbm [shape: f32[32,64], index: 4, kind: input, shape index: {}]   ;;  %s2533_s5 = inlined_call_operand.vmem [shape: f32[1,64], index: 5, kind: input, shape index: {}]   ;;  %s2534_s6 = inlined_call_operand.vmem [shape: f32[64,64], index: 6, kind: input, shape index: {}]   ;;  %s2535_s7 = inlined_call_operand.vmem [shape: f32[1,64], index: 7, kind: input, shape index: {}]   ;;  %s2536_s8 = inlined_call_operand.vmem [shape: f32[64,4], index: 8, kind: input, shape index: {}]   ;;  %s2537_s9 = inlined_call_operand.vmem [shape: f32[1,4], index: 9, kind: input, shape index: {}]   ;;  %s2538_s10 = inlined_call_operand.vmem [shape: f32[2,8,4], index: 10, kind: output, shape index: {}]  }
   0x1   :  { %16 = vsyncpa [#allocation6], 0  ;;  %s2165_s13 = smov [#allocation5]   ;;  %s2166_s15 = smov [#allocation3]  }
   0x2   :  { %s36_s14 = sshll.u32 %s2165_s13, 4  ;;  %s24_s16 = sshll.u32 %s2166_s15, 4  ;;  %s37_s14 = int_to_ptr.vmem [resolvable:$true] %s36_s14  ;;  %s2230_s16 = int_to_ptr.vmem [resolvable:$true] %s24_s16 }
   0x3   :  { %s2095_s19 = scalar_lea.hbm %s2530_s2, 512 }
   0x4   :  { %p2096_p0 = scmp.ne.s32.totalorder %s2530_s2, %s2095_s19  ;;  %p2099_p1 = scmp.lt.u32.totalorder %s2095_s19, %s2530_s2 }
   0x6   :  { %p2101_p2 = pnand %p2099_p1, %p2096_p0 }
   0x8   :  { %2104 = shalt.err (!%p2101_p2)
}
   0x9   :  { %s2105_s24 = scalar_lea.vmem %s37_s14, 512  ;;  %p2110_p4 = scmp.lt.s32.totalorder %s37_s14, %s37_s14 }
   0xa   :  { %p2106_p3 = scmp.ne.s32.totalorder %s37_s14, %s2105_s24  ;;  %p2111_p5 = scmp.lt.s32.totalorder %s2105_s24, %s2105_s24 }
   0xc   :  { %p2112_p6 = por %p2111_p5, %p2110_p4 }
   0xe   :  { %p2113_p7 = pnand %p2112_p6, %p2106_p3 }
  0x10   :  { %2116 = shalt.err (!%p2113_p7)
}
  0x11   :  { %s2167_s25 = smov 128   ;;  %s2168_s26 = smov 8  }
  0x12   :  { %42 = dma.hbm_to_vmem [thread:$0]  %s2530_s2, 512, %s37_s14, [#allocation6], %s2167_s25, %s2167_s25, %s2168_s26  }
  0x13   :  { %s2117_s11 = scalar_lea.hbm %s2529_s1, 256 }
  0x14   :  { %p2118_p8 = scmp.ne.s32.totalorder %s2529_s1, %s2117_s11  ;;  %p2121_p9 = scmp.lt.u32.totalorder %s2117_s11, %s2529_s1 }
  0x16   :  { %p2123_p10 = pnand %p2121_p9, %p2118_p8 }
  0x18   :  { %2126 = shalt.err (!%p2123_p10)
}
  0x19   :  { %s2127_s18 = scalar_lea.vmem %s2230_s16, 256  ;;  %p2132_p12 = scmp.lt.s32.totalorder %s2230_s16, %s2230_s16 }
  0x1a   :  { %p2128_p11 = scmp.ne.s32.totalorder %s2230_s16, %s2127_s18  ;;  %p2133_p13 = scmp.lt.s32.totalorder %s2127_s18, %s2127_s18 }
  0x1c   :  { %p2134_p0 = por %p2133_p13, %p2132_p12 }
  0x1e   :  { %p2135_p1 = pnand %p2134_p0, %p2128_p11 }
  0x20   :  { %2138 = shalt.err (!%p2135_p1)
}
  0x21   :  { %30 = dma.hbm_to_vmem [thread:$0]  %s2529_s1, 256, %s2230_s16, [#allocation4], %s2167_s25, %s2167_s25, %s2168_s26  }
  0x22   :  { %s2169_s19 = smov [#allocation7]   ;;  %s2139_s23 = scalar_lea.hbm %s2532_s4, 512 }
  0x23   :  { %s50_s20 = sshll.u32 %s2169_s19, 4  ;;  %p2140_p2 = scmp.ne.s32.totalorder %s2532_s4, %s2139_s23  ;;  %s51_s20 = int_to_ptr.vmem [resolvable:$true] %s50_s20 }
  0x24   :  { %p2143_p3 = scmp.lt.u32.totalorder %s2139_s23, %s2532_s4 }
  0x26   :  { %p2145_p4 = pnand %p2143_p3, %p2140_p2 }
  0x28   :  { %2148 = shalt.err (!%p2145_p4)
}
  0x29   :  { %s2149_s30 = scalar_lea.vmem %s51_s20, 512  ;;  %p2154_p6 = scmp.lt.s32.totalorder %s51_s20, %s51_s20 }
  0x2a   :  { %p2150_p5 = scmp.ne.s32.totalorder %s51_s20, %s2149_s30  ;;  %p2155_p7 = scmp.lt.s32.totalorder %s2149_s30, %s2149_s30 }
  0x2c   :  { %p2156_p8 = por %p2155_p7, %p2154_p6 }
  0x2e   :  { %p2157_p9 = pnand %p2156_p8, %p2150_p5 }
  0x30   :  { %2160 = shalt.err (!%p2157_p9)
}
  0x31   :  { %56 = dma.hbm_to_vmem [thread:$0]  %s2532_s4, 512, %s51_s20, [#allocation6], %s2167_s25, %s2167_s25, %s2168_s26  }
  0x32   :  { %2161 = dma.done.wait [#allocation4], 256  }
  0x33   :  { %2162 = vsyncadd [#allocation4], 4294967040 }
  0x34   :  { %2163 = dma.done.wait [#allocation6], 1024  }
  0x35   :  { %2164 = vsyncadd [#allocation6], 4294966272  ;;  %v2170_v0 = vmov 0.0|0.0   ;;  %vm2171_vm0 = vmmov 0   ;;  %v2172_v1 = vmov 0.0   ;;  %vm87_vm1 = vcmask 130048  }
  0x36   :  { %1865 = vmatprep.subr.bf16.mxu1 %v2170_v0  ;;  %1732 = vmatprep.mubr.msk.f32.mxu1 %vm2171_vm0, %v2172_v1  ;;  %v78_v2 = vld [vmem:[#allocation3] sm:$0xff]  ;;  %v79_v3 = vld [vmem:[#allocation3 + $0x8] sm:$0xff]  ;;  %v76_v4 = vld [vmem:[%s2528_s0] sm:$0xff]  ;;  %s2173_s13 = smov 64   ;;  %vm310_vm2 = vcmask 1041409   ;;  %vm177_vm3 = vcmask 261120  }
  0x37   :  { %v1861_v5 = vpack.c.bf16 %v79_v3, %v78_v2  ;;  %1721 = vmatprep.mubr.msk.f32.mxu0 %vm87_vm1, %v76_v4  ;;  %v171_v6 = vld [vmem:[#allocation5] sm:$0xff]  ;;  %v172_v7 = vld [vmem:[#allocation5 + $0x8] sm:$0xff]  ;;  %v173_v9 = vld [vmem:[#allocation5 + $0x10] sm:$0xff]  ;;  %vm1273_vm4 = vcmask 1040384   ;;  %vm1276_vm5 = vcmask 1041408   ;;  %vm1279_vm6 = vcmask 1042432  }
  0x38   :  { %v2289_v8 = vpack.c.bf16 %v172_v7, %v171_v6  ;;  %v174_v10 = vld [vmem:[#allocation5 + $0x18] sm:$0xff]  ;;  %v77_v11 = vld [vmem:[%s2528_s0 + $0x8] sm:$0xff]  ;;  %v1612_v13 = vld [vmem:[%s2531_s3] ss:$0 sm:$0xff]  ;;  %s2174_s3 = smov 32   ;;  %vm1282_vm7 = vcmask 1043456  }
  0x39   :  { %1862 = vmatprep.subr.bf16.mxu0 %v1861_v5  ;;  %v2295_v12 = vpack.c.bf16 %v174_v10, %v173_v9  ;;  %vm1285_vm8 = vcmask 1044480   ;;  %vm1288_vm9 = vcmask 1045504   ;;  %vm1291_vm10 = vcmask 1046528  }
  0x3a   :  { %1864 = vmatpush3.bf16.msra.mxu0 %v1861_v5  ;;  %1867 = vmatpush3.bf16.msra.mxu1 %v2289_v8  ;;  %vm1411_vm13 = vcmask 523264  }
  0x3b   :  { %1868 = vmatprep.subr.bf16.mxu1 %v2170_v0  ;;  %1871 = vmatprep.subr.bf16.mxu0 %v2170_v0 }
  0x3d   :  { %1722 = vmatmul.mubr.msk.f32.vlgmr.msra.gmra.mrb[0].mxu0 %vm87_vm1, %v77_v11 }
  0x3e   :  { %1870 = vmatpush3.bf16.msra.mxu1 %v2295_v12  ;;  %1873 = vmatpush3.bf16.msra.mxu0 %v2289_v8 }
  0x3f   :  { %1874 = vmatprep.subr.bf16.mxu0 %v2170_v0  ;;  %1743 = vmatprep.mubr.msk.f32.mxu0 %vm2171_vm0, %v2172_v1 }
  0x40   :  { %1877 = vmatprep.subr.bf16.mxu1 %v2170_v0 }
  0x41   :  { %1733 = vmatmul.mubr.f32.vlgmr.msra.gmra.mrb[0].mxu1 %v2172_v1 }
  0x42   :  { %1876 = vmatpush3.bf16.msra.mxu0 %v2295_v12  ;;  %1879 = vmatpush3.bf16.msra.mxu1 %v2289_v8 }
  0x43   :  { %1880 = vmatprep.subr.bf16.mxu1 %v2170_v0  ;;  %1754 = vmatprep.mubr.msk.f32.mxu1 %vm2171_vm0, %v2172_v1 }
  0x44   :  { %1883 = vmatprep.subr.bf16.mxu0 %v2170_v0 }
  0x46   :  { %1882 = vmatpush3.bf16.msra.mxu1 %v2295_v12 }
  0x47   :  { %1889 = vmatprep.subr.bf16.mxu1 %v2170_v0 }
 0x110   :  { %v1723_v14 = vpop.f32.mrb[0].mxu0 }
 0x111   :  { %v166_v15 = vadd.f32 %v1723_v14, %v1612_v13  ;;  %v160_v16 = vpop.f32.mrb[1].mxu0 }
 0x112   :  { %v161_v17 = vadd.f32 %v1612_v13, %v160_v16 }
 0x113   :  { %170 = vst [vmem:[#allocation2 + $0x8] sm:$0xff] %v166_v15 }
 0x114   :  { %169 = vst [vmem:[#allocation2] sm:$0xff] %v161_v17  ;;  %v247_v18 = vpop.f32.mrb[0].mxu1 }
 0x115   :  { %v1734_v19 = vpop.f32.mrb[1].mxu1  ;;  %v252_v20 = vrot.slane %v247_v18, 1 }
 0x11a   :  { %v176_v21 = vld [vmem:[#allocation2 + $0x8] sm:$0x1]  ;;  %v306_v59 = vld [vmem:[#allocation2 + $0x9] sm:$0x1] }
 0x11b   :  { %v175_v22 = vld [vmem:[#allocation2] sm:$0x1]  ;;  %v256_v23 = vadd.f32 %v252_v20, %v176_v21  ;;  %v305_v54 = vld [vmem:[#allocation2 + $0x1] sm:$0x1] }
 0x11c   :  { %v255_v24 = vadd.f32 %v247_v18, %v175_v22 }
 0x11d   :  { %1963 = vtanh.f32 %v256_v23  ;;  %v1616_v27 = vmul.f32 -1.442695, %v256_v23 }
 0x11e   :  { %1965 = vtanh.f32 %v255_v24  ;;  %v1615_v28 = vmul.f32 -1.442695, %v255_v24 }
 0x11f   :  { %1967 = vpow2.f32 %v1616_v27 }
 0x120   :  { %1969 = vpow2.f32 %v1615_v28 }
 0x127   :  { %v1964_v25 = vpop.eup %1963 }
 0x128   :  { %277 = vrot.lane.b32.xlu0 %v1964_v25, %s2173_s13  ;;  %v1966_v26 = vpop.eup %1965 }
 0x129   :  { %v1968_v29 = vpop.eup %1967 }
 0x12a   :  { %v264_v30 = vadd.f32 1.0, %v1968_v29  ;;  %v1970_v31 = vpop.eup %1969 }
 0x12b   :  { %v263_v32 = vadd.f32 1.0, %v1970_v31 }
 0x12c   :  { %275 = vrot.lane.b32.xlu0 %v1966_v26, %s2173_s13  ;;  %1971 = vrcp.f32 %v264_v30  ;;  %v440_v30 = vld [vmem:[#allocation2 + $0x2] sm:$0x1] }
 0x12d   :  { %1973 = vrcp.f32 %v263_v32 }
 0x136   :  { %v1972_v33 = vpop.eup %1971 }
 0x137   :  { %v1974_v36 = vpop.eup %1973  ;;  %v272_v39 = vmul.f32 0.0, %v1972_v33 }
 0x138   :  { %v271_v42 = vmul.f32 0.0, %v1974_v36 }
 0x19a   :  { %v278_v34 = vpop.permute.xlu0 %277 }
 0x19b   :  { %v282_v35 = vmul.f32 %v1972_v33, %v278_v34 }
 0x19d   :  { %287 = vrot.lane.b32.xlu1 %v282_v35, %s2174_s3  ;;  %v441_v35 = vld [vmem:[#allocation2 + $0xa] sm:$0x1] }
 0x19e   :  { %v276_v37 = vpop.permute.xlu0 %275 }
 0x19f   :  { %v281_v38 = vmul.f32 %v1974_v36, %v276_v37 }
 0x1a1   :  { %285 = vrot.lane.b32.xlu1 %v281_v38, %s2174_s3 }
 0x20f   :  { %v288_v40 = vpop.permute.xlu1 %287 }
 0x210   :  { %v292_v41 = vadd.f32 %v288_v40, %v272_v39 }
 0x212   :  { %1975 = vtanh.f32 %v292_v41 }
 0x213   :  { %v286_v43 = vpop.permute.xlu1 %285 }
 0x214   :  { %v291_v44 = vadd.f32 %v286_v43, %v271_v42 }
 0x216   :  { %1977 = vtanh.f32 %v291_v44 }
 0x21c   :  { %v1976_v45 = vpop.eup %1975 }
 0x21d   :  { %299 = vrot.lane.b32.xlu0 %v1976_v45, %s2173_s13 }
 0x220   :  { %v1978_v46 = vpop.eup %1977 }
 0x221   :  { %297 = vrot.lane.b32.xlu1 %v1978_v46, %s2173_s13 }
 0x28f   :  { %v300_v47 = vpop.permute.xlu0 %299 }
 0x290   :  { %v2324_v48 = vmul.f32 %v1972_v33, %v300_v47 }
 0x292   :  { %v309_v50 = vrot.slane %v2324_v48, 7 }
 0x293   :  { %v298_v49 = vpop.permute.xlu1 %297 }
 0x294   :  { %v2327_v51 = vmul.f32 %v1974_v36, %v298_v49 }
 0x296   :  { %v311_v52 = vsel %vm310_vm2, %v309_v50, %v2327_v51 }
 0x297   :  { %312 = vrot.lane.b32.xlu0 %v311_v52, %s2174_s3 }
 0x309   :  { %v313_v53 = vpop.permute.xlu0 %312 }
 0x30a   :  { %1744 = vmatmul.mubr.msk.f32.vlgmr.msra.gmra.mrb[2].mxu0 %vm177_vm3, %v313_v53 }
 0x30b   :  { %1885 = vmatpush3.bf16.msra.mxu0 %v2289_v8  ;;  %1765 = vmatprep.mubr.msk.f32.mxu0 %vm2171_vm0, %v2172_v1 }
 0x30c   :  { %1886 = vmatprep.subr.bf16.mxu0 %v2170_v0 }
 0x30f   :  { %1888 = vmatpush3.bf16.msra.mxu0 %v2295_v12 }
 0x310   :  { %1895 = vmatprep.subr.bf16.mxu0 %v2170_v0 }
 0x3dd   :  { %v382_v55 = vpop.f32.mrb[2].mxu0 }
 0x3de   :  { %v387_v56 = vrot.slane %v382_v55, 1  ;;  %v390_v57 = vadd.f32 %v382_v55, %v305_v54  ;;  %v1745_v58 = vpop.f32.mrb[3].mxu0 }
 0x3e0   :  { %v391_v60 = vadd.f32 %v387_v56, %v306_v59  ;;  %1979 = vtanh.f32 %v390_v57  ;;  %v1618_v63 = vmul.f32 -1.442695, %v390_v57 }
 0x3e2   :  { %1981 = vtanh.f32 %v391_v60  ;;  %v1619_v2 = vmul.f32 -1.442695, %v391_v60 }
 0x3e3   :  { %1983 = vpow2.f32 %v1618_v63 }
 0x3e4   :  { %1985 = vpow2.f32 %v1619_v2 }
 0x3ea   :  { %v1980_v61 = vpop.eup %1979 }
 0x3eb   :  { %410 = vrot.lane.b32.xlu0 %v1980_v61, %s2173_s13 }
 0x3ec   :  { %v1982_v62 = vpop.eup %1981 }
 0x3ed   :  { %412 = vrot.lane.b32.xlu1 %v1982_v62, %s2173_s13  ;;  %v1984_v3 = vpop.eup %1983 }
 0x3ee   :  { %v1986_v4 = vpop.eup %1985  ;;  %v398_v5 = vadd.f32 1.0, %v1984_v3 }
 0x3ef   :  { %v399_v6 = vadd.f32 1.0, %v1986_v4 }
 0x3f0   :  { %1987 = vrcp.f32 %v398_v5 }
 0x3f1   :  { %1989 = vrcp.f32 %v399_v6 }
 0x3fa   :  { %v1988_v7 = vpop.eup %1987 }
 0x3fb   :  { %v1990_v11 = vpop.eup %1989  ;;  %v406_v15 = vmul.f32 %v1988_v7, %v291_v44 }
 0x3fc   :  { %v407_v18 = vmul.f32 %v1990_v11, %v292_v41 }
 0x45d   :  { %v411_v9 = vpop.permute.xlu0 %410 }
 0x45e   :  { %v416_v10 = vmul.f32 %v1988_v7, %v411_v9 }
 0x45f   :  { %v413_v13 = vpop.permute.xlu1 %412 }
 0x460   :  { %420 = vrot.lane.b32.xlu0 %v416_v10, %s2174_s3  ;;  %v417_v14 = vmul.f32 %v1990_v11, %v413_v13 }
 0x462   :  { %422 = vrot.lane.b32.xlu1 %v417_v14, %s2174_s3 }
 0x4d2   :  { %v421_v16 = vpop.permute.xlu0 %420 }
 0x4d3   :  { %v426_v17 = vadd.f32 %v421_v16, %v406_v15 }
 0x4d4   :  { %v423_v19 = vpop.permute.xlu1 %422 }
 0x4d5   :  { %1991 = vtanh.f32 %v426_v17  ;;  %v427_v20 = vadd.f32 %v423_v19, %v407_v18  ;;  %v575_v18 = vld [vmem:[#allocation2 + $0xb] sm:$0x1] }
 0x4d7   :  { %1993 = vtanh.f32 %v427_v20 }
 0x4df   :  { %v1992_v21 = vpop.eup %1991 }
 0x4e0   :  { %432 = vrot.lane.b32.xlu0 %v1992_v21, %s2173_s13 }
 0x4e1   :  { %v1994_v22 = vpop.eup %1993 }
 0x4e2   :  { %434 = vrot.lane.b32.xlu1 %v1994_v22, %s2173_s13 }
 0x552   :  { %v433_v23 = vpop.permute.xlu0 %432 }
 0x553   :  { %v2347_v26 = vmul.f32 %v1988_v7, %v433_v23 }
 0x554   :  { %v435_v24 = vpop.permute.xlu1 %434 }
 0x555   :  { %v2345_v25 = vmul.f32 %v1990_v11, %v435_v24  ;;  %v1244_v61 = vrot.slane %v2347_v26, 7 }
 0x557   :  { %v444_v27 = vrot.slane %v2345_v25, 7  ;;  %v1274_v4 = vsel %vm1273_vm4, %v2327_v51, %v1244_v61 }
 0x559   :  { %v445_v28 = vsel %vm310_vm2, %v444_v27, %v2347_v26  ;;  %v1275_v10 = vsel %vm1273_vm4, %v2324_v48, %v444_v27  ;;  %v574_v48 = vld [vmem:[#allocation2 + $0x3] sm:$0x1] }
 0x55a   :  { %446 = vrot.lane.b32.xlu1 %v445_v28, %s2174_s3 }
 0x5cc   :  { %v447_v29 = vpop.permute.xlu1 %446 }
 0x5cd   :  { %1755 = vmatmul.mubr.msk.f32.vlgmr.msra.gmra.mrb[2].mxu1 %vm177_vm3, %v447_v29 }
 0x5ce   :  { %1891 = vmatpush3.bf16.msra.mxu1 %v2289_v8  ;;  %1776 = vmatprep.mubr.msk.f32.mxu1 %vm2171_vm0, %v2172_v1 }
 0x5cf   :  { %1892 = vmatprep.subr.bf16.mxu1 %v2170_v0 }
 0x5d2   :  { %1894 = vmatpush3.bf16.msra.mxu1 %v2295_v12 }
 0x5d3   :  { %1901 = vmatprep.subr.bf16.mxu1 %v2170_v0 }
 0x6a0   :  { %v516_v31 = vpop.f32.mrb[2].mxu1 }
 0x6a1   :  { %v521_v32 = vrot.slane %v516_v31, 1  ;;  %v524_v33 = vadd.f32 %v516_v31, %v440_v30  ;;  %v1756_v34 = vpop.f32.mrb[3].mxu1 }
 0x6a3   :  { %v525_v36 = vadd.f32 %v521_v32, %v441_v35  ;;  %1995 = vtanh.f32 %v524_v33  ;;  %v1621_v39 = vmul.f32 -1.442695, %v524_v33 }
 0x6a5   :  { %1997 = vtanh.f32 %v525_v36  ;;  %v1622_v40 = vmul.f32 -1.442695, %v525_v36 }
 0x6a6   :  { %1999 = vpow2.f32 %v1621_v39 }
 0x6a7   :  { %2001 = vpow2.f32 %v1622_v40 }
 0x6ad   :  { %v1996_v37 = vpop.eup %1995 }
 0x6ae   :  { %544 = vrot.lane.b32.xlu1 %v1996_v37, %s2173_s13 }
 0x6af   :  { %v1998_v38 = vpop.eup %1997 }
 0x6b0   :  { %546 = vrot.lane.b32.xlu0 %v1998_v38, %s2173_s13  ;;  %v2000_v41 = vpop.eup %1999 }
 0x6b1   :  { %v2002_v42 = vpop.eup %2001  ;;  %v532_v43 = vadd.f32 1.0, %v2000_v41 }
 0x6b2   :  { %v533_v44 = vadd.f32 1.0, %v2002_v42 }
 0x6b3   :  { %2003 = vrcp.f32 %v532_v43 }
 0x6b4   :  { %2005 = vrcp.f32 %v533_v44 }
 0x6bd   :  { %v2004_v45 = vpop.eup %2003 }
 0x6be   :  { %v2006_v49 = vpop.eup %2005  ;;  %v540_v53 = vmul.f32 %v2004_v45, %v426_v17 }
 0x6bf   :  { %v541_v56 = vmul.f32 %v2006_v49, %v427_v20 }
 0x720   :  { %v545_v46 = vpop.permute.xlu1 %544 }
 0x721   :  { %v550_v47 = vmul.f32 %v2004_v45, %v545_v46 }
 0x722   :  { %v547_v50 = vpop.permute.xlu0 %546 }
 0x723   :  { %554 = vrot.lane.b32.xlu1 %v550_v47, %s2174_s3  ;;  %v551_v52 = vmul.f32 %v2006_v49, %v547_v50 }
 0x725   :  { %556 = vrot.lane.b32.xlu0 %v551_v52, %s2174_s3 }
 0x795   :  { %v555_v54 = vpop.permute.xlu1 %554 }
 0x796   :  { %v2366_v55 = vadd.f32 %v555_v54, %v540_v53 }
 0x797   :  { %v557_v57 = vpop.permute.xlu0 %556 }
 0x798   :  { %2007 = vtanh.f32 %v2366_v55  ;;  %v2369_v58 = vadd.f32 %v557_v57, %v541_v56 }
 0x79a   :  { %2009 = vtanh.f32 %v2369_v58 }
 0x7a2   :  { %v2008_v59 = vpop.eup %2007 }
 0x7a3   :  { %566 = vrot.lane.b32.xlu1 %v2008_v59, %s2173_s13 }
 0x7a4   :  { %v2010_v60 = vpop.eup %2009 }
 0x7a5   :  { %568 = vrot.lane.b32.xlu0 %v2010_v60, %s2173_s13  ;;  %v709_v60 = vld [vmem:[#allocation2 + $0xc] sm:$0x1] }
 0x815   :  { %v567_v62 = vpop.permute.xlu1 %566 }
 0x816   :  { %v572_v63 = vmul.f32 %v2004_v45, %v567_v62 }
 0x817   :  { %v569_v3 = vpop.permute.xlu0 %568 }
 0x818   :  { %v1247_v2 = vrot.slane %v572_v63, 6  ;;  %v573_v5 = vmul.f32 %v2006_v49, %v569_v3 }
 0x81a   :  { %v2376_v6 = vsel %vm1276_vm5, %v1274_v4, %v1247_v2  ;;  %v578_v7 = vrot.slane %v573_v5, 7  ;;  %v1248_v9 = vrot.slane %v573_v5, 6 }
 0x81c   :  { %v2381_v11 = vsel %vm1276_vm5, %v1275_v10, %v1248_v9  ;;  %v579_v13 = vsel %vm310_vm2, %v578_v7, %v572_v63 }
 0x81d   :  { %580 = vrot.lane.b32.xlu0 %v579_v13, %s2174_s3 }
 0x88f   :  { %v581_v14 = vpop.permute.xlu0 %580 }
 0x890   :  { %1766 = vmatmul.mubr.msk.f32.vlgmr.msra.gmra.mrb[4].mxu0 %vm177_vm3, %v581_v14 }
 0x891   :  { %1897 = vmatpush3.bf16.msra.mxu0 %v2289_v8  ;;  %1787 = vmatprep.mubr.msk.f32.mxu0 %vm2171_vm0, %v2172_v1 }
 0x892   :  { %1898 = vmatprep.subr.bf16.mxu0 %v2170_v0 }
 0x895   :  { %1900 = vmatpush3.bf16.msra.mxu0 %v2295_v12 }
 0x896   :  { %1907 = vmatprep.subr.bf16.mxu0 %v2170_v0 }
 0x963   :  { %v650_v51 = vpop.f32.mrb[4].mxu0 }
 0x964   :  { %v655_v15 = vrot.slane %v650_v51, 1  ;;  %v658_v16 = vadd.f32 %v650_v51, %v574_v48  ;;  %v1767_v17 = vpop.f32.mrb[5].mxu0 }
 0x966   :  { %v659_v19 = vadd.f32 %v655_v15, %v575_v18  ;;  %2011 = vtanh.f32 %v658_v16  ;;  %v1624_v22 = vmul.f32 -1.442695, %v658_v16 }
 0x968   :  { %2013 = vtanh.f32 %v659_v19  ;;  %v1625_v23 = vmul.f32 -1.442695, %v659_v19 }
 0x969   :  { %2015 = vpow2.f32 %v1624_v22 }
 0x96a   :  { %2017 = vpow2.f32 %v1625_v23 }
 0x970   :  { %v2012_v20 = vpop.eup %2011 }
 0x971   :  { %678 = vrot.lane.b32.xlu0 %v2012_v20, %s2173_s13 }
 0x972   :  { %v2014_v21 = vpop.eup %2013 }
 0x973   :  { %680 = vrot.lane.b32.xlu1 %v2014_v21, %s2173_s13  ;;  %v2016_v24 = vpop.eup %2015 }
 0x974   :  { %v2018_v25 = vpop.eup %2017  ;;  %v666_v26 = vadd.f32 1.0, %v2016_v24 }
 0x975   :  { %v667_v27 = vadd.f32 1.0, %v2018_v25 }
 0x976   :  { %2019 = vrcp.f32 %v666_v26 }
 0x977   :  { %2021 = vrcp.f32 %v667_v27 }
 0x980   :  { %v2020_v28 = vpop.eup %2019 }
 0x981   :  { %v2022_v31 = vpop.eup %2021  ;;  %v674_v34 = vmul.f32 %v2020_v28, %v2366_v55  ;;  %v708_v55 = vld [vmem:[#allocation2 + $0x4] sm:$0x1] }
 0x982   :  { %v675_v37 = vmul.f32 %v2022_v31, %v2369_v58 }
 0x9e3   :  { %v679_v29 = vpop.permute.xlu0 %678 }
 0x9e4   :  { %v684_v30 = vmul.f32 %v2020_v28, %v679_v29 }
 0x9e5   :  { %v681_v32 = vpop.permute.xlu1 %680 }
 0x9e6   :  { %688 = vrot.lane.b32.xlu0 %v684_v30, %s2174_s3  ;;  %v685_v33 = vmul.f32 %v2022_v31, %v681_v32 }
 0x9e8   :  { %690 = vrot.lane.b32.xlu1 %v685_v33, %s2174_s3  ;;  %v842_v33 = vld [vmem:[#allocation2 + $0x5] sm:$0x1] }
 0xa58   :  { %v689_v35 = vpop.permute.xlu0 %688 }
 0xa59   :  { %v694_v36 = vadd.f32 %v689_v35, %v674_v34 }
 0xa5a   :  { %v691_v38 = vpop.permute.xlu1 %690 }
 0xa5b   :  { %2023 = vtanh.f32 %v694_v36  ;;  %v695_v39 = vadd.f32 %v691_v38, %v675_v37  ;;  %v843_v38 = vld [vmem:[#allocation2 + $0xd] sm:$0x1] }
 0xa5d   :  { %2025 = vtanh.f32 %v695_v39 }
 0xa65   :  { %v2024_v40 = vpop.eup %2023 }
 0xa66   :  { %700 = vrot.lane.b32.xlu0 %v2024_v40, %s2173_s13 }
 0xa67   :  { %v2026_v41 = vpop.eup %2025 }
 0xa68   :  { %702 = vrot.lane.b32.xlu1 %v2026_v41, %s2173_s13 }
 0xad8   :  { %v701_v42 = vpop.permute.xlu0 %700 }
 0xad9   :  { %v706_v43 = vmul.f32 %v2020_v28, %v701_v42 }
 0xada   :  { %v703_v45 = vpop.permute.xlu1 %702 }
 0xadb   :  { %v1251_v44 = vrot.slane %v706_v43, 5  ;;  %v707_v46 = vmul.f32 %v2022_v31, %v703_v45 }
 0xadd   :  { %v1280_v47 = vsel %vm1279_vm6, %v2376_v6, %v1251_v44  ;;  %v712_v49 = vrot.slane %v707_v46, 7  ;;  %v1252_v50 = vrot.slane %v707_v46, 5 }
 0xadf   :  { %v1281_v52 = vsel %vm1279_vm6, %v2381_v11, %v1252_v50  ;;  %v713_v53 = vsel %vm310_vm2, %v712_v49, %v706_v43 }
 0xae0   :  { %714 = vrot.lane.b32.xlu1 %v713_v53, %s2174_s3 }
 0xb52   :  { %v715_v54 = vpop.permute.xlu1 %714 }
 0xb53   :  { %1777 = vmatmul.mubr.msk.f32.vlgmr.msra.gmra.mrb[4].mxu1 %vm177_vm3, %v715_v54 }
 0xb54   :  { %1903 = vmatpush3.bf16.msra.mxu1 %v2289_v8  ;;  %1798 = vmatprep.mubr.msk.f32.mxu1 %vm2171_vm0, %v2172_v1 }
 0xb55   :  { %1904 = vmatprep.subr.bf16.mxu1 %v2170_v0 }
 0xb58   :  { %1906 = vmatpush3.bf16.msra.mxu1 %v2295_v12 }
 0xc26   :  { %v784_v56 = vpop.f32.mrb[4].mxu1 }
 0xc27   :  { %v789_v57 = vrot.slane %v784_v56, 1  ;;  %v792_v58 = vadd.f32 %v784_v56, %v708_v55  ;;  %v1778_v59 = vpop.f32.mrb[5].mxu1 }
 0xc29   :  { %v793_v61 = vadd.f32 %v789_v57, %v709_v60  ;;  %2027 = vtanh.f32 %v792_v58  ;;  %v1627_v2 = vmul.f32 -1.442695, %v792_v58 }
 0xc2b   :  { %2029 = vtanh.f32 %v793_v61  ;;  %v1628_v3 = vmul.f32 -1.442695, %v793_v61 }
 0xc2c   :  { %2031 = vpow2.f32 %v1627_v2 }
 0xc2d   :  { %2033 = vpow2.f32 %v1628_v3 }
 0xc33   :  { %v2028_v62 = vpop.eup %2027 }
 0xc34   :  { %812 = vrot.lane.b32.xlu1 %v2028_v62, %s2173_s13 }
 0xc35   :  { %v2030_v63 = vpop.eup %2029 }
 0xc36   :  { %814 = vrot.lane.b32.xlu0 %v2030_v63, %s2173_s13  ;;  %v2032_v4 = vpop.eup %2031 }
 0xc37   :  { %v2034_v5 = vpop.eup %2033  ;;  %v800_v6 = vadd.f32 1.0, %v2032_v4 }
 0xc38   :  { %v801_v7 = vadd.f32 1.0, %v2034_v5 }
 0xc39   :  { %2035 = vrcp.f32 %v800_v6 }
 0xc3a   :  { %2037 = vrcp.f32 %v801_v7 }
 0xc43   :  { %v2036_v9 = vpop.eup %2035 }
 0xc44   :  { %v2038_v13 = vpop.eup %2037  ;;  %v808_v51 = vmul.f32 %v2036_v9, %v694_v36 }
 0xc45   :  { %v809_v17 = vmul.f32 %v2038_v13, %v695_v39 }
 0xca6   :  { %v813_v10 = vpop.permute.xlu1 %812 }
 0xca7   :  { %v818_v11 = vmul.f32 %v2036_v9, %v813_v10  ;;  %v976_v10 = vld [vmem:[#allocation2 + $0x6] sm:$0x1] }
 0xca8   :  { %v815_v14 = vpop.permute.xlu0 %814 }
 0xca9   :  { %822 = vrot.lane.b32.xlu1 %v818_v11, %s2174_s3  ;;  %v819_v48 = vmul.f32 %v2038_v13, %v815_v14 }
 0xcab   :  { %824 = vrot.lane.b32.xlu0 %v819_v48, %s2174_s3 }
 0xd1b   :  { %v823_v15 = vpop.permute.xlu1 %822 }
 0xd1c   :  { %v828_v16 = vadd.f32 %v823_v15, %v808_v51  ;;  %v977_v51 = vld [vmem:[#allocation2 + $0xe] sm:$0x1] }
 0xd1d   :  { %v825_v18 = vpop.permute.xlu0 %824 }
 0xd1e   :  { %2039 = vtanh.f32 %v828_v16  ;;  %v829_v19 = vadd.f32 %v825_v18, %v809_v17 }
 0xd20   :  { %2041 = vtanh.f32 %v829_v19 }
 0xd28   :  { %v2040_v20 = vpop.eup %2039 }
 0xd29   :  { %834 = vrot.lane.b32.xlu1 %v2040_v20, %s2173_s13 }
 0xd2a   :  { %v2042_v21 = vpop.eup %2041 }
 0xd2b   :  { %836 = vrot.lane.b32.xlu0 %v2042_v21, %s2173_s13 }
 0xd9b   :  { %v835_v22 = vpop.permute.xlu1 %834 }
 0xd9c   :  { %v840_v23 = vmul.f32 %v2036_v9, %v835_v22 }
 0xd9d   :  { %v837_v25 = vpop.permute.xlu0 %836 }
 0xd9e   :  { %v1255_v24 = vrot.slane %v840_v23, 4  ;;  %v841_v26 = vmul.f32 %v2038_v13, %v837_v25 }
 0xda0   :  { %v1283_v27 = vsel %vm1282_vm7, %v1280_v47, %v1255_v24  ;;  %v846_v28 = vrot.slane %v841_v26, 7  ;;  %v1256_v29 = vrot.slane %v841_v26, 4 }
 0xda2   :  { %v2416_v30 = vsel %vm1282_vm7, %v1281_v52, %v1256_v29  ;;  %v847_v31 = vsel %vm310_vm2, %v846_v28, %v840_v23 }
 0xda3   :  { %848 = vrot.lane.b32.xlu0 %v847_v31, %s2174_s3 }
 0xe15   :  { %v849_v32 = vpop.permute.xlu0 %848 }
 0xe16   :  { %1788 = vmatmul.mubr.msk.f32.vlgmr.msra.gmra.mrb[6].mxu0 %vm177_vm3, %v849_v32 }
 0xe17   :  { %1909 = vmatpush3.bf16.msra.mxu0 %v2289_v8  ;;  %1809 = vmatprep.mubr.msk.f32.mxu0 %vm2171_vm0, %v2172_v1  ;;  %vm1603_vm0 = vcmask 31744  }
 0xe18   :  { %1910 = vmatprep.subr.bf16.mxu0 %v2170_v0 }
 0xe1b   :  { %1912 = vmatpush3.bf16.msra.mxu0 %v2295_v12 }
 0xee9   :  { %v918_v34 = vpop.f32.mrb[6].mxu0 }
 0xeea   :  { %v923_v35 = vrot.slane %v918_v34, 1  ;;  %v926_v36 = vadd.f32 %v918_v34, %v842_v33  ;;  %v1789_v37 = vpop.f32.mrb[7].mxu0 }
 0xeec   :  { %v927_v39 = vadd.f32 %v923_v35, %v843_v38  ;;  %2043 = vtanh.f32 %v926_v36  ;;  %v1630_v1 = vmul.f32 -1.442695, %v926_v36 }
 0xeee   :  { %2045 = vtanh.f32 %v927_v39  ;;  %v1631_v41 = vmul.f32 -1.442695, %v927_v39 }
 0xeef   :  { %2047 = vpow2.f32 %v1630_v1 }
 0xef0   :  { %2049 = vpow2.f32 %v1631_v41 }
 0xef6   :  { %v2044_v40 = vpop.eup %2043 }
 0xef7   :  { %946 = vrot.lane.b32.xlu0 %v2044_v40, %s2173_s13 }
 0xef8   :  { %v2046_v8 = vpop.eup %2045 }
 0xef9   :  { %948 = vrot.lane.b32.xlu1 %v2046_v8, %s2173_s13  ;;  %v2048_v0 = vpop.eup %2047 }
 0xefa   :  { %v2050_v12 = vpop.eup %2049  ;;  %v934_v42 = vadd.f32 1.0, %v2048_v0 }
 0xefb   :  { %v935_v43 = vadd.f32 1.0, %v2050_v12 }
 0xefc   :  { %2051 = vrcp.f32 %v934_v42 }
 0xefd   :  { %2053 = vrcp.f32 %v935_v43 }
 0xf06   :  { %v2052_v44 = vpop.eup %2051 }
 0xf07   :  { %v2054_v47 = vpop.eup %2053  ;;  %v942_v52 = vmul.f32 %v2052_v44, %v828_v16 }
 0xf08   :  { %v943_v55 = vmul.f32 %v2054_v47, %v829_v19 }
 0xf69   :  { %v947_v45 = vpop.permute.xlu0 %946 }
 0xf6a   :  { %v952_v46 = vmul.f32 %v2052_v44, %v947_v45  ;;  %v1110_v45 = vld [vmem:[#allocation2 + $0x7] sm:$0x1] }
 0xf6b   :  { %v949_v49 = vpop.permute.xlu1 %948 }
 0xf6c   :  { %956 = vrot.lane.b32.xlu0 %v952_v46, %s2174_s3  ;;  %v953_v50 = vmul.f32 %v2054_v47, %v949_v49 }
 0xf6e   :  { %958 = vrot.lane.b32.xlu1 %v953_v50, %s2174_s3 }
 0xfde   :  { %v957_v53 = vpop.permute.xlu0 %956 }
 0xfdf   :  { %v962_v54 = vadd.f32 %v957_v53, %v942_v52  ;;  %v1111_v52 = vld [vmem:[#allocation2 + $0xf] sm:$0x1] }
 0xfe0   :  { %v959_v56 = vpop.permute.xlu1 %958 }
 0xfe1   :  { %2055 = vtanh.f32 %v962_v54  ;;  %v963_v57 = vadd.f32 %v959_v56, %v943_v55 }
 0xfe3   :  { %2057 = vtanh.f32 %v963_v57 }
 0xfeb   :  { %v2056_v58 = vpop.eup %2055 }
 0xfec   :  { %968 = vrot.lane.b32.xlu0 %v2056_v58, %s2173_s13 }
 0xfed   :  { %v2058_v59 = vpop.eup %2057 }
 0xfee   :  { %970 = vrot.lane.b32.xlu1 %v2058_v59, %s2173_s13 }
0x105e   :  { %v969_v60 = vpop.permute.xlu0 %968 }
0x105f   :  { %v974_v61 = vmul.f32 %v2052_v44, %v969_v60 }
0x1060   :  { %v971_v63 = vpop.permute.xlu1 %970 }
0x1061   :  { %v1259_v62 = vrot.slane %v974_v61, 3  ;;  %v975_v2 = vmul.f32 %v2054_v47, %v971_v63 }
0x1063   :  { %v1286_v3 = vsel %vm1285_vm8, %v1283_v27, %v1259_v62  ;;  %v980_v4 = vrot.slane %v975_v2, 7  ;;  %v1260_v5 = vrot.slane %v975_v2, 3 }
0x1065   :  { %v981_v6 = vsel %vm310_vm2, %v980_v4, %v974_v61  ;;  %v1287_v7 = vsel %vm1285_vm8, %v2416_v30, %v1260_v5 }
0x1066   :  { %982 = vrot.lane.b32.xlu1 %v981_v6, %s2174_s3 }
0x10d8   :  { %v983_v9 = vpop.permute.xlu1 %982 }
0x10d9   :  { %1799 = vmatmul.mubr.msk.f32.vlgmr.msra.gmra.mrb[6].mxu1 %vm177_vm3, %v983_v9 }
0x11ac   :  { %v1052_v11 = vpop.f32.mrb[6].mxu1 }
0x11ad   :  { %v1057_v13 = vrot.slane %v1052_v11, 1  ;;  %v1060_v14 = vadd.f32 %v1052_v11, %v976_v10  ;;  %v1800_v48 = vpop.f32.mrb[7].mxu1 }
0x11ae   :  { %v1295_v48 = vld [vmem:[#allocation7 + $0x8] sm:$0xff] }
0x11af   :  { %v1061_v15 = vadd.f32 %v1057_v13, %v977_v51  ;;  %2059 = vtanh.f32 %v1060_v14  ;;  %v1633_v18 = vmul.f32 -1.442695, %v1060_v14  ;;  %v1294_v14 = vld [vmem:[#allocation7] sm:$0xff]  ;;  %v1296_v51 = vld [vmem:[#allocation7 + $0x10] sm:$0xff] }
0x11b1   :  { %2061 = vtanh.f32 %v1061_v15  ;;  %v1634_v19 = vmul.f32 -1.442695, %v1061_v15  ;;  %v1913_v15 = vpack.c.bf16 %v1295_v48, %v1294_v14 }
0x11b2   :  { %2063 = vpow2.f32 %v1633_v18 }
0x11b3   :  { %2065 = vpow2.f32 %v1634_v19  ;;  %1914 = vmatprep.subr.bf16.mxu1 %v1913_v15 }
0x11b4   :  { %1916 = vmatpush3.bf16.msra.mxu1 %v1913_v15 }
0x11b9   :  { %v2060_v16 = vpop.eup %2059 }
0x11ba   :  { %1080 = vrot.lane.b32.xlu1 %v2060_v16, %s2173_s13  ;;  %v1297_v16 = vld [vmem:[#allocation7 + $0x18] sm:$0xff] }
0x11bb   :  { %v2062_v17 = vpop.eup %2061 }
0x11bc   :  { %1082 = vrot.lane.b32.xlu0 %v2062_v17, %s2173_s13  ;;  %v2064_v20 = vpop.eup %2063  ;;  %v1917_v17 = vpack.c.bf16 %v1297_v16, %v1296_v51 }
0x11bd   :  { %v2066_v21 = vpop.eup %2065  ;;  %v1068_v22 = vadd.f32 1.0, %v2064_v20  ;;  %v1396_v20 = vld [vmem:[%s2534_s6] sm:$0xff] }
0x11be   :  { %v1069_v23 = vadd.f32 1.0, %v2066_v21  ;;  %1918 = vmatprep.subr.bf16.mxu1 %v1917_v17  ;;  %v1397_v21 = vld [vmem:[%s2534_s6 + $0x8] sm:$0xff] }
0x11bf   :  { %2067 = vrcp.f32 %v1068_v22  ;;  %1920 = vmatpush3.bf16.msra.mxu1 %v1917_v17  ;;  %v1398_v22 = vld [vmem:[%s2534_s6 + $0x10] sm:$0xff] }
0x11c0   :  { %2069 = vrcp.f32 %v1069_v23  ;;  %v1921_v23 = vpack.c.bf16 %v1397_v21, %v1396_v20 }
0x11c2   :  { %1922 = vmatprep.subr.bf16.mxu0 %v1921_v23 }
0x11c9   :  { %v2068_v24 = vpop.eup %2067 }
0x11ca   :  { %v2070_v27 = vpop.eup %2069  ;;  %v1076_v30 = vmul.f32 %v2068_v24, %v962_v54 }
0x11cb   :  { %v1077_v33 = vmul.f32 %v2070_v27, %v963_v57 }
0x122c   :  { %v1081_v25 = vpop.permute.xlu1 %1080 }
0x122d   :  { %v1086_v26 = vmul.f32 %v2068_v24, %v1081_v25 }
0x122e   :  { %v1083_v28 = vpop.permute.xlu0 %1082 }
0x122f   :  { %1090 = vrot.lane.b32.xlu1 %v1086_v26, %s2174_s3  ;;  %v1087_v29 = vmul.f32 %v2070_v27, %v1083_v28 }
0x1231   :  { %1092 = vrot.lane.b32.xlu0 %v1087_v29, %s2174_s3 }
0x12a1   :  { %v1091_v31 = vpop.permute.xlu1 %1090 }
0x12a2   :  { %v1096_v32 = vadd.f32 %v1091_v31, %v1076_v30 }
0x12a3   :  { %v1093_v34 = vpop.permute.xlu0 %1092 }
0x12a4   :  { %2071 = vtanh.f32 %v1096_v32  ;;  %v1097_v35 = vadd.f32 %v1093_v34, %v1077_v33 }
0x12a6   :  { %2073 = vtanh.f32 %v1097_v35 }
0x12ae   :  { %v2072_v36 = vpop.eup %2071 }
0x12af   :  { %1102 = vrot.lane.b32.xlu1 %v2072_v36, %s2173_s13  ;;  %v1400_v36 = vld [vmem:[%s2534_s6 + $0x20] sm:$0xff] }
0x12b0   :  { %v2074_v37 = vpop.eup %2073 }
0x12b1   :  { %1104 = vrot.lane.b32.xlu0 %v2074_v37, %s2173_s13  ;;  %v1401_v37 = vld [vmem:[%s2534_s6 + $0x28] sm:$0xff] }
0x1321   :  { %v1103_v38 = vpop.permute.xlu1 %1102 }
0x1322   :  { %v1108_v39 = vmul.f32 %v2068_v24, %v1103_v38  ;;  %v1399_v24 = vld [vmem:[%s2534_s6 + $0x18] sm:$0xff]  ;;  %v1929_v38 = vpack.c.bf16 %v1401_v37, %v1400_v36 }
0x1323   :  { %v1105_v8 = vpop.permute.xlu0 %1104  ;;  %v1925_v25 = vpack.c.bf16 %v1399_v24, %v1398_v22 }
0x1324   :  { %v1263_v40 = vrot.slane %v1108_v39, 2  ;;  %v1109_v1 = vmul.f32 %v2070_v27, %v1105_v8 }
0x1326   :  { %v2442_v41 = vsel %vm1288_vm9, %v1286_v3, %v1263_v40  ;;  %v1114_v0 = vrot.slane %v1109_v1, 7  ;;  %v1264_v12 = vrot.slane %v1109_v1, 2  ;;  %v1403_v40 = vld [vmem:[%s2534_s6 + $0x38] sm:$0xff]  ;;  %v1499_v1 = vld [vmem:[%s2536_s8] sm:$0xff] }
0x1328   :  { %v1115_v42 = vsel %vm310_vm2, %v1114_v0, %v1108_v39  ;;  %v2445_v43 = vsel %vm1288_vm9, %v1287_v7, %v1264_v12  ;;  %v1402_v39 = vld [vmem:[%s2534_s6 + $0x30] sm:$0xff] }
0x1329   :  { %1116 = vrot.lane.b32.xlu0 %v1115_v42, %s2174_s3  ;;  %v1933_v8 = vpack.c.bf16 %v1403_v40, %v1402_v39  ;;  %v1501_v0 = vld [vmem:[%s2536_s8 + $0x10] sm:$0xff]  ;;  %v1502_v42 = vld [vmem:[%s2536_s8 + $0x18] sm:$0xff] }
0x139b   :  { %v1117_v44 = vpop.permute.xlu0 %1116 }
0x139c   :  { %1810 = vmatmul.mubr.msk.f32.vlgmr.msra.gmra.mrb[8].mxu0 %vm177_vm3, %v1117_v44  ;;  %v1638_v44 = vld [vmem:[%s2533_s5] ss:$0 sm:$0xff] }
0x139d   :  { %1924 = vmatpush3.bf16.msra.mxu0 %v1921_v23 }
0x139e   :  { %1926 = vmatprep.subr.bf16.mxu0 %v1925_v25 }
0x13a1   :  { %1928 = vmatpush3.bf16.msra.mxu0 %v1925_v25 }
0x13a2   :  { %1930 = vmatprep.subr.bf16.mxu0 %v1929_v38 }
0x13a5   :  { %1932 = vmatpush3.bf16.msra.mxu0 %v1929_v38 }
0x13a6   :  { %1934 = vmatprep.subr.bf16.mxu0 %v1933_v8 }
0x13a9   :  { %1936 = vmatpush3.bf16.msra.mxu0 %v1933_v8 }
0x146f   :  { %v1186_v46 = vpop.f32.mrb[8].mxu0 }
0x1470   :  { %v1191_v47 = vrot.slane %v1186_v46, 1  ;;  %v1194_v49 = vadd.f32 %v1186_v46, %v1110_v45  ;;  %v1811_v50 = vpop.f32.mrb[9].mxu0 }
0x1472   :  { %v1195_v53 = vadd.f32 %v1191_v47, %v1111_v52  ;;  %2075 = vtanh.f32 %v1194_v49  ;;  %v1636_v56 = vmul.f32 -1.442695, %v1194_v49 }
0x1474   :  { %2077 = vtanh.f32 %v1195_v53  ;;  %v1637_v57 = vmul.f32 -1.442695, %v1195_v53 }
0x1475   :  { %2079 = vpow2.f32 %v1636_v56  ;;  %v1504_v56 = vld [vmem:[%s2536_s8 + $0x28] sm:$0xff] }
0x1476   :  { %2081 = vpow2.f32 %v1637_v57 }
0x147c   :  { %v2076_v54 = vpop.eup %2075 }
0x147d   :  { %1214 = vrot.lane.b32.xlu1 %v2076_v54, %s2173_s13 }
0x147e   :  { %v2078_v55 = vpop.eup %2077 }
0x147f   :  { %1216 = vrot.lane.b32.xlu0 %v2078_v55, %s2173_s13  ;;  %v2080_v58 = vpop.eup %2079  ;;  %v1503_v55 = vld [vmem:[%s2536_s8 + $0x20] sm:$0xff] }
0x1480   :  { %v2082_v59 = vpop.eup %2081  ;;  %v1202_v60 = vadd.f32 1.0, %v2080_v58  ;;  %v1945_v57 = vpack.c.bf16 %v1504_v56, %v1503_v55  ;;  %v1505_v58 = vld [vmem:[%s2536_s8 + $0x30] sm:$0xff] }
0x1481   :  { %v1203_v61 = vadd.f32 1.0, %v2082_v59  ;;  %v1506_v59 = vld [vmem:[%s2536_s8 + $0x38] sm:$0xff] }
0x1482   :  { %2083 = vrcp.f32 %v1202_v60  ;;  %v1949_v60 = vpack.c.bf16 %v1506_v59, %v1505_v58 }
0x1483   :  { %2085 = vrcp.f32 %v1203_v61  ;;  %v1641_v61 = vld [vmem:[%s2535_s7] ss:$0 sm:$0xff] }
0x148c   :  { %v2084_v62 = vpop.eup %2083 }
0x148d   :  { %v2086_v3 = vpop.eup %2085  ;;  %v1210_v6 = vmul.f32 %v2084_v62, %v1096_v32 }
0x148e   :  { %v1211_v10 = vmul.f32 %v2086_v3, %v1097_v35 }
0x14ef   :  { %v1215_v63 = vpop.permute.xlu1 %1214 }
0x14f0   :  { %v1220_v2 = vmul.f32 %v2084_v62, %v1215_v63 }
0x14f1   :  { %v1217_v4 = vpop.permute.xlu0 %1216 }
0x14f2   :  { %1224 = vrot.lane.b32.xlu1 %v1220_v2, %s2174_s3  ;;  %v1221_v5 = vmul.f32 %v2086_v3, %v1217_v4 }
0x14f4   :  { %1226 = vrot.lane.b32.xlu0 %v1221_v5, %s2174_s3 }
0x1564   :  { %v1225_v7 = vpop.permute.xlu1 %1224 }
0x1565   :  { %v1230_v9 = vadd.f32 %v1225_v7, %v1210_v6 }
0x1566   :  { %v1227_v11 = vpop.permute.xlu0 %1226 }
0x1567   :  { %2087 = vtanh.f32 %v1230_v9  ;;  %v1231_v13 = vadd.f32 %v1227_v11, %v1211_v10  ;;  %v1644_v9 = vld [vmem:[%s2537_s9] ss:$0 sm:$0xff] }
0x1569   :  { %2089 = vtanh.f32 %v1231_v13 }
0x1571   :  { %v2088_v18 = vpop.eup %2087 }
0x1572   :  { %1236 = vrot.lane.b32.xlu1 %v2088_v18, %s2173_s13 }
0x1573   :  { %v2090_v19 = vpop.eup %2089 }
0x1574   :  { %1238 = vrot.lane.b32.xlu0 %v2090_v19, %s2173_s13 }
0x15e4   :  { %v1237_v26 = vpop.permute.xlu1 %1236 }
0x15e5   :  { %v1242_v27 = vmul.f32 %v2084_v62, %v1237_v26 }
0x15e6   :  { %v1239_v29 = vpop.permute.xlu0 %1238 }
0x15e7   :  { %v1269_v28 = vrot.slane %v1242_v27, 1  ;;  %v1243_v30 = vmul.f32 %v2086_v3, %v1239_v29 }
0x15e9   :  { %v1292_v31 = vsel %vm1291_vm10, %v2442_v41, %v1269_v28  ;;  %v1270_v32 = vrot.slane %v1243_v30, 1  ;;  %v1500_v41 = vld [vmem:[%s2536_s8 + $0x8] sm:$0xff] }
0x15ea   :  { %1307 = vrot.lane.b32.xlu1 %v1292_v31, %s2174_s3  ;;  %v1937_v12 = vpack.c.bf16 %v1500_v41, %v1499_v1 }
0x15eb   :  { %v1293_v33 = vsel %vm1291_vm10, %v2445_v43, %v1270_v32  ;;  %v1941_v43 = vpack.c.bf16 %v1502_v42, %v1501_v0 }
0x15ec   :  { %1309 = vrot.lane.b32.xlu0 %v1293_v33, %s2174_s3  ;;  %1938 = vmatprep.subr.bf16.mxu1 %v1937_v12 }
0x165c   :  { %v1308_v34 = vpop.permute.xlu1 %1307 }
0x165d   :  { %1820 = vmatprep.mubr.msk.f32.mxu1 %vm177_vm3, %v1308_v34 }
0x165e   :  { %v1310_v35 = vpop.permute.xlu0 %1309 }
0x165f   :  { %1821 = vmatmul.mubr.msk.f32.vlgmr.msra.gmra.mrb[8].mxu1 %vm177_vm3, %v1310_v35 }
0x1660   :  { %1940 = vmatpush3.bf16.msra.mxu1 %v1937_v12 }
0x1661   :  { %1942 = vmatprep.subr.bf16.mxu1 %v1941_v43 }
0x1664   :  { %1944 = vmatpush3.bf16.msra.mxu1 %v1941_v43 }
0x1665   :  { %1946 = vmatprep.subr.bf16.mxu1 %v1945_v57 }
0x1668   :  { %1948 = vmatpush3.bf16.msra.mxu1 %v1945_v57 }
0x1669   :  { %1950 = vmatprep.subr.bf16.mxu1 %v1949_v60 }
0x166c   :  { %1952 = vmatpush3.bf16.msra.mxu1 %v1949_v60 }
0x1732   :  { %v1822_v45 = vpop.f32.mrb[8].mxu1 }
0x1733   :  { %v1387_v46 = vadd.f32 %v1822_v45, %v1638_v44  ;;  %v1381_v47 = vpop.f32.mrb[9].mxu1 }
0x1734   :  { %v1382_v49 = vadd.f32 %v1638_v44, %v1381_v47 }
0x1735   :  { %v1393_v50 = vmul.f32 0.01, %v1387_v46  ;;  %vm1391_vm11 = vcmp.gt.f32.partialorder %v1387_v46, 0.0 }
0x1736   :  { %vm1390_vm12 = vcmp.gt.f32.partialorder %v1382_v49, 0.0  ;;  %v1392_v52 = vmul.f32 0.01, %v1382_v49 }
0x1737   :  { %v1395_v54 = vsel %vm1391_vm11, %v1387_v46, %v1393_v50 }
0x1738   :  { %v1394_v53 = vsel %vm1390_vm12, %v1382_v49, %v1392_v52 }
0x1739   :  { %1839 = vmatprep.mubr.msk.f32.mxu0 %vm1411_vm13, %v1394_v53 }
0x173a   :  { %1840 = vmatmul.mubr.msk.f32.vlgmr.msra.gmra.mrb[10].mxu0 %vm1411_vm13, %v1395_v54 }
0x180d   :  { %v1841_v62 = vpop.f32.mrb[10].mxu0 }
0x180e   :  { %v1490_v63 = vadd.f32 %v1841_v62, %v1641_v61  ;;  %v1484_v2 = vpop.f32.mrb[11].mxu0 }
0x180f   :  { %v1485_v3 = vadd.f32 %v1641_v61, %v1484_v2 }
0x1810   :  { %v1496_v4 = vmul.f32 0.01, %v1490_v63  ;;  %vm1494_vm14 = vcmp.gt.f32.partialorder %v1490_v63, 0.0 }
0x1811   :  { %vm1493_vm15 = vcmp.gt.f32.partialorder %v1485_v3, 0.0  ;;  %v1495_v5 = vmul.f32 0.01, %v1485_v3 }
0x1812   :  { %v1498_v7 = vsel %vm1494_vm14, %v1490_v63, %v1496_v4 }
0x1813   :  { %v1497_v6 = vsel %vm1493_vm15, %v1485_v3, %v1495_v5 }
0x1814   :  { %1858 = vmatprep.mubr.msk.f32.mxu1 %vm1411_vm13, %v1497_v6 }
0x1815   :  { %1859 = vmatmul.mubr.msk.f32.vlgmr.msra.gmra.mrb[10].mxu1 %vm1411_vm13, %v1498_v7 }
0x18e8   :  { %v1860_v10 = vpop.f32.mrb[10].mxu1 }
0x18e9   :  { %v1592_v11 = vadd.f32 %v1860_v10, %v1644_v9  ;;  %v1586_v13 = vpop.f32.mrb[11].mxu1 }
0x18ea   :  { %v1587_v14 = vadd.f32 %v1644_v9, %v1586_v13 }
0x18eb   :  { %v1596_v48 = vand.u32 2147483647, %v1592_v11 }
0x18ec   :  { %v1595_v51 = vand.u32 2147483647, %v1587_v14 }
0x18ed   :  { %v1598_v15 = vadd.f32 1.0, %v1596_v48 }
0x18ee   :  { %v1597_v16 = vadd.f32 1.0, %v1595_v51 }
0x18ef   :  { %2091 = vrcp.f32 %v1598_v15 }
0x18f0   :  { %2093 = vrcp.f32 %v1597_v16 }
0x18f9   :  { %v2092_v17 = vpop.eup %2091 }
0x18fa   :  { %v2094_v18 = vpop.eup %2093  ;;  %v1602_v19 = vmul.f32 %v2092_v17, %v1592_v11 }
0x18fb   :  { %v1600_v20 = vmul.f32 %v2094_v18, %v1587_v14 }
0x18fc   :  { %1605 = vst.msk [vmem:[%s2538_s10 + $0x8] sm:$0xff] %vm1603_vm0, %v1602_v19 }
0x18fd   :  { %1604 = vst.msk [vmem:[%s2538_s10] sm:$0xff] %vm1603_vm0, %v1600_v20 }
0x18fe   :  { %1610 = vsyncpa [#allocation4], 1 }
0x18ff   :  { %1611 = vsyncpa [#allocation6], 1 }

</bundles_post_ra>
